<compile_context>
chip_gen: v5e
topology: v5e:2x2
jax: 0.10.0
libtpu: 0.0.40
codegen_flags: <defaults>
</compile_context>

<pallas_src>
import jax
import jax.numpy as jnp
from jax import lax
from jax.experimental import pallas as pl
from jax.experimental.pallas import tpu as pltpu


# ----------------------------- Pallas kernel --------------------------------

def _fused_embed_kernel(p1_ref, w1_ref, s1_ref, w2_ref, b2_ref, o_ref):
    # p1_ref: [T2, 16, K1]        bf16  (16 layer-1 patches per conv2 output)
    # w1_ref: [K1, C_mid]         bf16  (BN scale folded into columns)
    # s1_ref: [1, C_mid]          f32   (BN shift incl. conv1 bias)
    # w2_ref: [16, C_mid, C_out]  bf16  (conv2 weights, indexed by position r)
    # b2_ref: [1, C_out]          f32
    # o_ref : [T2, 1, C_out]      f32
    t2 = p1_ref.shape[0]
    n_pos = p1_ref.shape[1]
    c_out = o_ref.shape[-1]

    w1 = w1_ref[...]
    s1 = s1_ref[...]
    acc = jnp.zeros((t2, c_out), jnp.float32)

    # Static 16-way unroll over the conv2 kernel positions r = kh2*4 + kw2.
    # For each r: conv1 for the r-th layer-1 row of every output in the tile
    # (bf16 MXU matmul, f32 accum), fused BN-shift + ReLU epilogue, then the
    # r-th slice of conv2 accumulated into `acc`.  No intermediate leaves VMEM.
    for r in range(n_pos):
        y1 = jnp.dot(p1_ref[:, r, :], w1, preferred_element_type=jnp.float32)
        y1 = jnp.maximum(y1 + s1, 0.0).astype(jnp.bfloat16)
        acc = acc + jnp.dot(y1, w2_ref[r], preferred_element_type=jnp.float32)

    o_ref[:, 0, :] = (acc + b2_ref[...]).astype(o_ref.dtype)


# ------------------------------ tiling helper --------------------------------

def _pick_tile(m2, bytes_per_row, target_rows=512, target_bytes=4 << 20):
    """Largest divisor of m2 that keeps >= 2 grid steps (when possible, for
    v7x's two TensorCores) and a modest per-step block footprint."""
    cap = min(target_rows, max(1, target_bytes // max(bytes_per_row, 1)))
    if m2 >= 2:
        cap = min(cap, m2 // 2)
    cap = max(1, min(cap, m2))
    best = 1
    for t in range(1, cap + 1):
        if m2 % t == 0:
            best = t
    return best


# ------------------------------- forward pass --------------------------------

def embedding_bn_relu44_forward(x, params, *, eps=1e-5):
    """Conv(4,4,s4) -> BN(folded) -> ReLU -> Conv(4,4,s4), fully fused.

    x: [B, C_in, H, W] (NCHW, like PyTorch). Returns [B, C_out, H/16, W/16].
    """
    # TODO(synk): BatchNorm is folded as an inference-mode affine (running
    # stats); training-mode batch statistics are not computed here.
    w1, b1 = params["conv1_w"], params["conv1_b"]
    gamma, beta = params["bn_gamma"], params["bn_beta"]
    mean, var = params["bn_mean"], params["bn_var"]
    w2, b2 = params["conv2_w"], params["conv2_b"]

    B, C_in, H, W = x.shape
    C_mid = w1.shape[0]
    C_out = w2.shape[0]
    k = 4
    # TODO(synk): PyTorch Conv2d silently floors non-divisible spatial dims;
    # here H, W must be divisible by 16 (two stride-4 convs).
    assert H % (k * k) == 0 and W % (k * k) == 0, (H, W)
    Ho2, Wo2 = H // (k * k), W // (k * k)
    M2 = B * Ho2 * Wo2                      # number of final output pixels
    K1 = k * k * C_in                       # conv1 contraction size

    # ---- host-side (tiny) parameter packing --------------------------------
    scale1 = gamma / jnp.sqrt(var + eps)                         # [C_mid]
    shift1 = ((b1 - mean) * scale1 + beta).astype(jnp.float32)   # bias + BN
    # conv1 weight [C_mid, C_in, kh, kw] -> [K1, C_mid], K order (c, kh, kw),
    # with the BN scale folded into the output columns.
    w1_p = jnp.transpose(w1, (1, 2, 3, 0)).reshape(K1, C_mid)
    w1_p = (w1_p * scale1[None, :]).astype(jnp.bfloat16)
    # conv2 weight [C_out, C_mid, kh, kw] -> [16, C_mid, C_out], r = kh*4 + kw.
    w2_p = jnp.transpose(w2, (2, 3, 1, 0)).reshape(k * k, C_mid, C_out)
    w2_p = w2_p.astype(jnp.bfloat16)
    s1 = shift1[None, :]
    b2_r = b2.astype(jnp.float32)[None, :]

    # ---- layer-1 patches, grouped per conv2 output --------------------------
    # h = 16*ho2 + 4*i + kh ; w = 16*wo2 + 4*j + kw ; row r = i*4 + j.
    # Single fused XLA reshape/transpose(+bf16 cast) pass over the input.
    t = x.reshape(B, C_in, Ho2, k, k, Wo2, k, k)          # b,c,ho2,i,kh,wo2,j,kw
    t = jnp.transpose(t, (0, 2, 5, 3, 6, 1, 4, 7))        # b,ho2,wo2,i,j,c,kh,kw
    p1 = t.reshape(M2, k * k, K1).astype(jnp.bfloat16)    # [M2, 16, K1]

    # ---- tiling / VMEM budget ----------------------------------------------
    bytes_per_row = k * k * K1 * 2 + C_out * 4
    T2 = _pick_tile(M2, bytes_per_row)
    n_steps = M2 // T2
    block_bytes = T2 * bytes_per_row
    weight_bytes = (K1 * C_mid + k * k * C_mid * C_out) * 2 + (C_mid + C_out) * 4
    vmem_limit = int(min(32 << 20,
                         max(16 << 20, 4 * block_bytes + 2 * weight_bytes + (2 << 20))))

    out = pl.pallas_call(
        _fused_embed_kernel,
        out_shape=jax.ShapeDtypeStruct((M2, 1, C_out), jnp.float32),
        grid_spec=pltpu.PrefetchScalarGridSpec(
            num_scalar_prefetch=0,
            grid=(n_steps,),
            in_specs=[
                pl.BlockSpec((T2, k * k, K1), lambda i: (i, 0, 0)),
                pl.BlockSpec((K1, C_mid), lambda i: (0, 0)),
                pl.BlockSpec((1, C_mid), lambda i: (0, 0)),
                pl.BlockSpec((k * k, C_mid, C_out), lambda i: (0, 0, 0)),
                pl.BlockSpec((1, C_out), lambda i: (0, 0)),
            ],
            out_specs=pl.BlockSpec((T2, 1, C_out), lambda i: (i, 0, 0)),
        ),
        compiler_params=pltpu.CompilerParams(
            dimension_semantics=("parallel",),   # >=2 steps -> both v7x TCs
            vmem_limit_bytes=vmem_limit,
        ),
    )(p1, w1_p, s1, w2_p, b2_r)

    # [M2, 1, C_out] -> NCHW (final output is tiny; single cheap relayout).
    y = out.reshape(B, Ho2, Wo2, C_out)
    return jnp.transpose(y, (0, 3, 1, 2))


# ------------------------------- reference -----------------------------------

def _reference(x, params, eps=1e-5):
    """Matched-precision reference (bf16 matmul inputs, f32 accumulation)."""
    w1, b1 = params["conv1_w"], params["conv1_b"]
    gamma, beta = params["bn_gamma"], params["bn_beta"]
    mean, var = params["bn_mean"], params["bn_var"]
    w2, b2 = params["conv2_w"], params["conv2_b"]

    def conv(a, w):
        return lax.conv_general_dilated(
            a.astype(jnp.bfloat16), w.astype(jnp.bfloat16),
            window_strides=(4, 4), padding="VALID",
            dimension_numbers=("NCHW", "OIHW", "NCHW"),
            preferred_element_type=jnp.float32)

    y = conv(x, w1) + b1[None, :, None, None]
    y = (y - mean[None, :, None, None]) / jnp.sqrt(var[None, :, None, None] + eps)
    y = y * gamma[None, :, None, None] + beta[None, :, None, None]
    y = jnp.maximum(y, 0.0).astype(jnp.bfloat16)          # bf16 intermediate
    return conv(y, w2) + b2[None, :, None, None]


# ---------------------------------- main --------------------------------------

if __name__ == "__main__":
    B, C_in, H, W = 2, 4, 32, 32
    C_out = 32
    C_mid = C_out // 2
    k = 4

    key = jax.random.PRNGKey(0)
    keys = jax.random.split(key, 9)

    x = jax.random.normal(keys[0], (B, C_in, H, W), dtype=jnp.float32)

    bound1 = 1.0 / ((C_in * k * k) ** 0.5)
    bound2 = 1.0 / ((C_mid * k * k) ** 0.5)
    params = {
        "conv1_w": jax.random.uniform(keys[1], (C_mid, C_in, k, k),
                                      minval=-bound1, maxval=bound1,
                                      dtype=jnp.float32),
        "conv1_b": jax.random.uniform(keys[2], (C_mid,), minval=-bound1,
                                      maxval=bound1, dtype=jnp.float32),
        "bn_gamma": jax.random.uniform(keys[3], (C_mid,), minval=0.5,
                                       maxval=1.5, dtype=jnp.float32),
        "bn_beta": jax.random.uniform(keys[4], (C_mid,), minval=-0.5,
                                      maxval=0.5, dtype=jnp.float32),
        "bn_mean": jax.random.uniform(keys[5], (C_mid,), minval=-0.2,
                                      maxval=0.2, dtype=jnp.float32),
        "bn_var": jax.random.uniform(keys[6], (C_mid,), minval=0.5,
                                     maxval=1.5, dtype=jnp.float32),
        "conv2_w": jax.random.uniform(keys[7], (C_out, C_mid, k, k),
                                      minval=-bound2, maxval=bound2,
                                      dtype=jnp.float32),
        "conv2_b": jax.random.uniform(keys[8], (C_out,), minval=-bound2,
                                      maxval=bound2, dtype=jnp.float32),
    }

    out = jax.jit(embedding_bn_relu44_forward)(x, params)
    out = jax.block_until_ready(out)

    assert out.shape == (B, C_out, H // 16, W // 16), out.shape

    ref = _reference(x, params)
    max_err = float(jnp.max(jnp.abs(out - ref)))
    assert jnp.allclose(out, ref, atol=2e-2, rtol=2e-2), max_err

    print("KERNEL_OK")
</pallas_src>

<mosaic_0001>
module attributes {stable_mosaic.version = 11 : i64} {
  func.func @_fused_embed_kernel(%arg0: i32, %arg1: memref<4x16x64xbf16, #tpu.memory_space<vmem>>, %arg2: memref<64x16xbf16, #tpu.memory_space<vmem>>, %arg3: memref<1x16xf32, #tpu.memory_space<vmem>>, %arg4: memref<16x16x32xbf16, #tpu.memory_space<vmem>>, %arg5: memref<1x32xf32, #tpu.memory_space<vmem>>, %arg6: memref<4x1x32xf32, #tpu.memory_space<vmem>>) attributes {dimension_semantics = [#tpu.dimension_semantics<parallel>], iteration_bounds = array<i64: 2>, scalar_prefetch = 0 : i64, scratch_operands = 0 : i64, tpu.core_type = #tpu.core_type<tc>, window_params = [{transform_indices = @transform_0, window_bounds = array<i64: 4, 16, 64>}, {pipeline_mode = #tpu.pipeline_mode<synchronous>, transform_indices = @transform_1, window_bounds = array<i64: 64, 16>}, {pipeline_mode = #tpu.pipeline_mode<synchronous>, transform_indices = @transform_2, window_bounds = array<i64: 1, 16>}, {pipeline_mode = #tpu.pipeline_mode<synchronous>, transform_indices = @transform_3, window_bounds = array<i64: 16, 16, 32>}, {pipeline_mode = #tpu.pipeline_mode<synchronous>, transform_indices = @transform_4, window_bounds = array<i64: 1, 32>}, {transform_indices = @transform_5, window_bounds = array<i64: 4, 1, 32>}]} {
    %c0 = arith.constant 0 : index
    %c0_0 = arith.constant 0 : index
    %0 = vector.load %arg2[%c0, %c0_0] : memref<64x16xbf16, #tpu.memory_space<vmem>>, vector<64x16xbf16>
    %c0_1 = arith.constant 0 : index
    %c0_2 = arith.constant 0 : index
    %1 = vector.load %arg3[%c0_1, %c0_2] : memref<1x16xf32, #tpu.memory_space<vmem>>, vector<1x16xf32>
    %cst = arith.constant 0.000000e+00 : f32
    %2 = vector.broadcast %cst : f32 to vector<4x32xf32>
    %c0_3 = arith.constant 0 : index
    %c0_4 = arith.constant 0 : index
    %c0_5 = arith.constant 0 : index
    %3 = vector.load %arg1[%c0_3, %c0_4, %c0_5] : memref<4x16x64xbf16, #tpu.memory_space<vmem>>, vector<4x1x64xbf16>
    %4 = vector.shape_cast %3 : vector<4x1x64xbf16> to vector<4x64xbf16>
    %cst_6 = arith.constant dense<0.000000e+00> : vector<4x16xf32>
    %5 = tpu.matmul %4, %0, %cst_6 {dimension_numbers = #tpu.dot_dimension_numbers<[1], [0], [0], [1], [0, 0, 1, 1], [], []>} : vector<4x64xbf16>, vector<64x16xbf16>, vector<4x16xf32> -> vector<4x16xf32>
    %6 = vector.broadcast %1 : vector<1x16xf32> to vector<4x16xf32>
    %7 = arith.addf %5, %6 : vector<4x16xf32>
    %cst_7 = arith.constant 0.000000e+00 : f32
    %8 = vector.broadcast %cst_7 : f32 to vector<4x16xf32>
    %9 = arith.maximumf %7, %8 : vector<4x16xf32>
    %10 = arith.truncf %9 : vector<4x16xf32> to vector<4x16xbf16>
    %c0_8 = arith.constant 0 : index
    %c0_9 = arith.constant 0 : index
    %c0_10 = arith.constant 0 : index
    %11 = vector.load %arg4[%c0_8, %c0_9, %c0_10] : memref<16x16x32xbf16, #tpu.memory_space<vmem>>, vector<1x16x32xbf16>
    %12 = vector.shape_cast %11 : vector<1x16x32xbf16> to vector<16x32xbf16>
    %cst_11 = arith.constant dense<0.000000e+00> : vector<4x32xf32>
    %13 = tpu.matmul %10, %12, %cst_11 {dimension_numbers = #tpu.dot_dimension_numbers<[1], [0], [0], [1], [0, 0, 1, 1], [], []>} : vector<4x16xbf16>, vector<16x32xbf16>, vector<4x32xf32> -> vector<4x32xf32>
    %14 = arith.addf %2, %13 : vector<4x32xf32>
    %c0_12 = arith.constant 0 : index
    %c1 = arith.constant 1 : index
    %c0_13 = arith.constant 0 : index
    %15 = vector.load %arg1[%c0_12, %c1, %c0_13] : memref<4x16x64xbf16, #tpu.memory_space<vmem>>, vector<4x1x64xbf16>
    %16 = vector.shape_cast %15 : vector<4x1x64xbf16> to vector<4x64xbf16>
    %cst_14 = arith.constant dense<0.000000e+00> : vector<4x16xf32>
    %17 = tpu.matmul %16, %0, %cst_14 {dimension_numbers = #tpu.dot_dimension_numbers<[1], [0], [0], [1], [0, 0, 1, 1], [], []>} : vector<4x64xbf16>, vector<64x16xbf16>, vector<4x16xf32> -> vector<4x16xf32>
    %18 = vector.broadcast %1 : vector<1x16xf32> to vector<4x16xf32>
    %19 = arith.addf %17, %18 : vector<4x16xf32>
    %cst_15 = arith.constant 0.000000e+00 : f32
    %20 = vector.broadcast %cst_15 : f32 to vector<4x16xf32>
    %21 = arith.maximumf %19, %20 : vector<4x16xf32>
    %22 = arith.truncf %21 : vector<4x16xf32> to vector<4x16xbf16>
    %c1_16 = arith.constant 1 : index
    %c0_17 = arith.constant 0 : index
    %c0_18 = arith.constant 0 : index
    %23 = vector.load %arg4[%c1_16, %c0_17, %c0_18] : memref<16x16x32xbf16, #tpu.memory_space<vmem>>, vector<1x16x32xbf16>
    %24 = vector.shape_cast %23 : vector<1x16x32xbf16> to vector<16x32xbf16>
    %cst_19 = arith.constant dense<0.000000e+00> : vector<4x32xf32>
    %25 = tpu.matmul %22, %24, %cst_19 {dimension_numbers = #tpu.dot_dimension_numbers<[1], [0], [0], [1], [0, 0, 1, 1], [], []>} : vector<4x16xbf16>, vector<16x32xbf16>, vector<4x32xf32> -> vector<4x32xf32>
    %26 = arith.addf %14, %25 : vector<4x32xf32>
    %c0_20 = arith.constant 0 : index
    %c2 = arith.constant 2 : index
    %c0_21 = arith.constant 0 : index
    %27 = vector.load %arg1[%c0_20, %c2, %c0_21] : memref<4x16x64xbf16, #tpu.memory_space<vmem>>, vector<4x1x64xbf16>
    %28 = vector.shape_cast %27 : vector<4x1x64xbf16> to vector<4x64xbf16>
    %cst_22 = arith.constant dense<0.000000e+00> : vector<4x16xf32>
    %29 = tpu.matmul %28, %0, %cst_22 {dimension_numbers = #tpu.dot_dimension_numbers<[1], [0], [0], [1], [0, 0, 1, 1], [], []>} : vector<4x64xbf16>, vector<64x16xbf16>, vector<4x16xf32> -> vector<4x16xf32>
    %30 = vector.broadcast %1 : vector<1x16xf32> to vector<4x16xf32>
    %31 = arith.addf %29, %30 : vector<4x16xf32>
    %cst_23 = arith.constant 0.000000e+00 : f32
    %32 = vector.broadcast %cst_23 : f32 to vector<4x16xf32>
    %33 = arith.maximumf %31, %32 : vector<4x16xf32>
    %34 = arith.truncf %33 : vector<4x16xf32> to vector<4x16xbf16>
    %c2_24 = arith.constant 2 : index
    %c0_25 = arith.constant 0 : index
    %c0_26 = arith.constant 0 : index
    %35 = vector.load %arg4[%c2_24, %c0_25, %c0_26] : memref<16x16x32xbf16, #tpu.memory_space<vmem>>, vector<1x16x32xbf16>
    %36 = vector.shape_cast %35 : vector<1x16x32xbf16> to vector<16x32xbf16>
    %cst_27 = arith.constant dense<0.000000e+00> : vector<4x32xf32>
    %37 = tpu.matmul %34, %36, %cst_27 {dimension_numbers = #tpu.dot_dimension_numbers<[1], [0], [0], [1], [0, 0, 1, 1], [], []>} : vector<4x16xbf16>, vector<16x32xbf16>, vector<4x32xf32> -> vector<4x32xf32>
    %38 = arith.addf %26, %37 : vector<4x32xf32>
    %c0_28 = arith.constant 0 : index
    %c3 = arith.constant 3 : index
    %c0_29 = arith.constant 0 : index
    %39 = vector.load %arg1[%c0_28, %c3, %c0_29] : memref<4x16x64xbf16, #tpu.memory_space<vmem>>, vector<4x1x64xbf16>
    %40 = vector.shape_cast %39 : vector<4x1x64xbf16> to vector<4x64xbf16>
    %cst_30 = arith.constant dense<0.000000e+00> : vector<4x16xf32>
    %41 = tpu.matmul %40, %0, %cst_30 {dimension_numbers = #tpu.dot_dimension_numbers<[1], [0], [0], [1], [0, 0, 1, 1], [], []>} : vector<4x64xbf16>, vector<64x16xbf16>, vector<4x16xf32> -> vector<4x16xf32>
    %42 = vector.broadcast %1 : vector<1x16xf32> to vector<4x16xf32>
    %43 = arith.addf %41, %42 : vector<4x16xf32>
    %cst_31 = arith.constant 0.000000e+00 : f32
    %44 = vector.broadcast %cst_31 : f32 to vector<4x16xf32>
    %45 = arith.maximumf %43, %44 : vector<4x16xf32>
    %46 = arith.truncf %45 : vector<4x16xf32> to vector<4x16xbf16>
    %c3_32 = arith.constant 3 : index
    %c0_33 = arith.constant 0 : index
    %c0_34 = arith.constant 0 : index
    %47 = vector.load %arg4[%c3_32, %c0_33, %c0_34] : memref<16x16x32xbf16, #tpu.memory_space<vmem>>, vector<1x16x32xbf16>
    %48 = vector.shape_cast %47 : vector<1x16x32xbf16> to vector<16x32xbf16>
    %cst_35 = arith.constant dense<0.000000e+00> : vector<4x32xf32>
    %49 = tpu.matmul %46, %48, %cst_35 {dimension_numbers = #tpu.dot_dimension_numbers<[1], [0], [0], [1], [0, 0, 1, 1], [], []>} : vector<4x16xbf16>, vector<16x32xbf16>, vector<4x32xf32> -> vector<4x32xf32>
    %50 = arith.addf %38, %49 : vector<4x32xf32>
    %c0_36 = arith.constant 0 : index
    %c4 = arith.constant 4 : index
    %c0_37 = arith.constant 0 : index
    %51 = vector.load %arg1[%c0_36, %c4, %c0_37] : memref<4x16x64xbf16, #tpu.memory_space<vmem>>, vector<4x1x64xbf16>
    %52 = vector.shape_cast %51 : vector<4x1x64xbf16> to vector<4x64xbf16>
    %cst_38 = arith.constant dense<0.000000e+00> : vector<4x16xf32>
    %53 = tpu.matmul %52, %0, %cst_38 {dimension_numbers = #tpu.dot_dimension_numbers<[1], [0], [0], [1], [0, 0, 1, 1], [], []>} : vector<4x64xbf16>, vector<64x16xbf16>, vector<4x16xf32> -> vector<4x16xf32>
    %54 = vector.broadcast %1 : vector<1x16xf32> to vector<4x16xf32>
    %55 = arith.addf %53, %54 : vector<4x16xf32>
    %cst_39 = arith.constant 0.000000e+00 : f32
    %56 = vector.broadcast %cst_39 : f32 to vector<4x16xf32>
    %57 = arith.maximumf %55, %56 : vector<4x16xf32>
    %58 = arith.truncf %57 : vector<4x16xf32> to vector<4x16xbf16>
    %c4_40 = arith.constant 4 : index
    %c0_41 = arith.constant 0 : index
    %c0_42 = arith.constant 0 : index
    %59 = vector.load %arg4[%c4_40, %c0_41, %c0_42] : memref<16x16x32xbf16, #tpu.memory_space<vmem>>, vector<1x16x32xbf16>
    %60 = vector.shape_cast %59 : vector<1x16x32xbf16> to vector<16x32xbf16>
    %cst_43 = arith.constant dense<0.000000e+00> : vector<4x32xf32>
    %61 = tpu.matmul %58, %60, %cst_43 {dimension_numbers = #tpu.dot_dimension_numbers<[1], [0], [0], [1], [0, 0, 1, 1], [], []>} : vector<4x16xbf16>, vector<16x32xbf16>, vector<4x32xf32> -> vector<4x32xf32>
    %62 = arith.addf %50, %61 : vector<4x32xf32>
    %c0_44 = arith.constant 0 : index
    %c5 = arith.constant 5 : index
    %c0_45 = arith.constant 0 : index
    %63 = vector.load %arg1[%c0_44, %c5, %c0_45] : memref<4x16x64xbf16, #tpu.memory_space<vmem>>, vector<4x1x64xbf16>
    %64 = vector.shape_cast %63 : vector<4x1x64xbf16> to vector<4x64xbf16>
    %cst_46 = arith.constant dense<0.000000e+00> : vector<4x16xf32>
    %65 = tpu.matmul %64, %0, %cst_46 {dimension_numbers = #tpu.dot_dimension_numbers<[1], [0], [0], [1], [0, 0, 1, 1], [], []>} : vector<4x64xbf16>, vector<64x16xbf16>, vector<4x16xf32> -> vector<4x16xf32>
    %66 = vector.broadcast %1 : vector<1x16xf32> to vector<4x16xf32>
    %67 = arith.addf %65, %66 : vector<4x16xf32>
    %cst_47 = arith.constant 0.000000e+00 : f32
    %68 = vector.broadcast %cst_47 : f32 to vector<4x16xf32>
    %69 = arith.maximumf %67, %68 : vector<4x16xf32>
    %70 = arith.truncf %69 : vector<4x16xf32> to vector<4x16xbf16>
    %c5_48 = arith.constant 5 : index
    %c0_49 = arith.constant 0 : index
    %c0_50 = arith.constant 0 : index
    %71 = vector.load %arg4[%c5_48, %c0_49, %c0_50] : memref<16x16x32xbf16, #tpu.memory_space<vmem>>, vector<1x16x32xbf16>
    %72 = vector.shape_cast %71 : vector<1x16x32xbf16> to vector<16x32xbf16>
    %cst_51 = arith.constant dense<0.000000e+00> : vector<4x32xf32>
    %73 = tpu.matmul %70, %72, %cst_51 {dimension_numbers = #tpu.dot_dimension_numbers<[1], [0], [0], [1], [0, 0, 1, 1], [], []>} : vector<4x16xbf16>, vector<16x32xbf16>, vector<4x32xf32> -> vector<4x32xf32>
    %74 = arith.addf %62, %73 : vector<4x32xf32>
    %c0_52 = arith.constant 0 : index
    %c6 = arith.constant 6 : index
    %c0_53 = arith.constant 0 : index
    %75 = vector.load %arg1[%c0_52, %c6, %c0_53] : memref<4x16x64xbf16, #tpu.memory_space<vmem>>, vector<4x1x64xbf16>
    %76 = vector.shape_cast %75 : vector<4x1x64xbf16> to vector<4x64xbf16>
    %cst_54 = arith.constant dense<0.000000e+00> : vector<4x16xf32>
    %77 = tpu.matmul %76, %0, %cst_54 {dimension_numbers = #tpu.dot_dimension_numbers<[1], [0], [0], [1], [0, 0, 1, 1], [], []>} : vector<4x64xbf16>, vector<64x16xbf16>, vector<4x16xf32> -> vector<4x16xf32>
    %78 = vector.broadcast %1 : vector<1x16xf32> to vector<4x16xf32>
    %79 = arith.addf %77, %78 : vector<4x16xf32>
    %cst_55 = arith.constant 0.000000e+00 : f32
    %80 = vector.broadcast %cst_55 : f32 to vector<4x16xf32>
    %81 = arith.maximumf %79, %80 : vector<4x16xf32>
    %82 = arith.truncf %81 : vector<4x16xf32> to vector<4x16xbf16>
    %c6_56 = arith.constant 6 : index
    %c0_57 = arith.constant 0 : index
    %c0_58 = arith.constant 0 : index
    %83 = vector.load %arg4[%c6_56, %c0_57, %c0_58] : memref<16x16x32xbf16, #tpu.memory_space<vmem>>, vector<1x16x32xbf16>
    %84 = vector.shape_cast %83 : vector<1x16x32xbf16> to vector<16x32xbf16>
    %cst_59 = arith.constant dense<0.000000e+00> : vector<4x32xf32>
    %85 = tpu.matmul %82, %84, %cst_59 {dimension_numbers = #tpu.dot_dimension_numbers<[1], [0], [0], [1], [0, 0, 1, 1], [], []>} : vector<4x16xbf16>, vector<16x32xbf16>, vector<4x32xf32> -> vector<4x32xf32>
    %86 = arith.addf %74, %85 : vector<4x32xf32>
    %c0_60 = arith.constant 0 : index
    %c7 = arith.constant 7 : index
    %c0_61 = arith.constant 0 : index
    %87 = vector.load %arg1[%c0_60, %c7, %c0_61] : memref<4x16x64xbf16, #tpu.memory_space<vmem>>, vector<4x1x64xbf16>
    %88 = vector.shape_cast %87 : vector<4x1x64xbf16> to vector<4x64xbf16>
    %cst_62 = arith.constant dense<0.000000e+00> : vector<4x16xf32>
    %89 = tpu.matmul %88, %0, %cst_62 {dimension_numbers = #tpu.dot_dimension_numbers<[1], [0], [0], [1], [0, 0, 1, 1], [], []>} : vector<4x64xbf16>, vector<64x16xbf16>, vector<4x16xf32> -> vector<4x16xf32>
    %90 = vector.broadcast %1 : vector<1x16xf32> to vector<4x16xf32>
    %91 = arith.addf %89, %90 : vector<4x16xf32>
    %cst_63 = arith.constant 0.000000e+00 : f32
    %92 = vector.broadcast %cst_63 : f32 to vector<4x16xf32>
    %93 = arith.maximumf %91, %92 : vector<4x16xf32>
    %94 = arith.truncf %93 : vector<4x16xf32> to vector<4x16xbf16>
    %c7_64 = arith.constant 7 : index
    %c0_65 = arith.constant 0 : index
    %c0_66 = arith.constant 0 : index
    %95 = vector.load %arg4[%c7_64, %c0_65, %c0_66] : memref<16x16x32xbf16, #tpu.memory_space<vmem>>, vector<1x16x32xbf16>
    %96 = vector.shape_cast %95 : vector<1x16x32xbf16> to vector<16x32xbf16>
    %cst_67 = arith.constant dense<0.000000e+00> : vector<4x32xf32>
    %97 = tpu.matmul %94, %96, %cst_67 {dimension_numbers = #tpu.dot_dimension_numbers<[1], [0], [0], [1], [0, 0, 1, 1], [], []>} : vector<4x16xbf16>, vector<16x32xbf16>, vector<4x32xf32> -> vector<4x32xf32>
    %98 = arith.addf %86, %97 : vector<4x32xf32>
    %c0_68 = arith.constant 0 : index
    %c8 = arith.constant 8 : index
    %c0_69 = arith.constant 0 : index
    %99 = vector.load %arg1[%c0_68, %c8, %c0_69] : memref<4x16x64xbf16, #tpu.memory_space<vmem>>, vector<4x1x64xbf16>
    %100 = vector.shape_cast %99 : vector<4x1x64xbf16> to vector<4x64xbf16>
    %cst_70 = arith.constant dense<0.000000e+00> : vector<4x16xf32>
    %101 = tpu.matmul %100, %0, %cst_70 {dimension_numbers = #tpu.dot_dimension_numbers<[1], [0], [0], [1], [0, 0, 1, 1], [], []>} : vector<4x64xbf16>, vector<64x16xbf16>, vector<4x16xf32> -> vector<4x16xf32>
    %102 = vector.broadcast %1 : vector<1x16xf32> to vector<4x16xf32>
    %103 = arith.addf %101, %102 : vector<4x16xf32>
    %cst_71 = arith.constant 0.000000e+00 : f32
    %104 = vector.broadcast %cst_71 : f32 to vector<4x16xf32>
    %105 = arith.maximumf %103, %104 : vector<4x16xf32>
    %106 = arith.truncf %105 : vector<4x16xf32> to vector<4x16xbf16>
    %c8_72 = arith.constant 8 : index
    %c0_73 = arith.constant 0 : index
    %c0_74 = arith.constant 0 : index
    %107 = vector.load %arg4[%c8_72, %c0_73, %c0_74] : memref<16x16x32xbf16, #tpu.memory_space<vmem>>, vector<1x16x32xbf16>
    %108 = vector.shape_cast %107 : vector<1x16x32xbf16> to vector<16x32xbf16>
    %cst_75 = arith.constant dense<0.000000e+00> : vector<4x32xf32>
    %109 = tpu.matmul %106, %108, %cst_75 {dimension_numbers = #tpu.dot_dimension_numbers<[1], [0], [0], [1], [0, 0, 1, 1], [], []>} : vector<4x16xbf16>, vector<16x32xbf16>, vector<4x32xf32> -> vector<4x32xf32>
    %110 = arith.addf %98, %109 : vector<4x32xf32>
    %c0_76 = arith.constant 0 : index
    %c9 = arith.constant 9 : index
    %c0_77 = arith.constant 0 : index
    %111 = vector.load %arg1[%c0_76, %c9, %c0_77] : memref<4x16x64xbf16, #tpu.memory_space<vmem>>, vector<4x1x64xbf16>
    %112 = vector.shape_cast %111 : vector<4x1x64xbf16> to vector<4x64xbf16>
    %cst_78 = arith.constant dense<0.000000e+00> : vector<4x16xf32>
    %113 = tpu.matmul %112, %0, %cst_78 {dimension_numbers = #tpu.dot_dimension_numbers<[1], [0], [0], [1], [0, 0, 1, 1], [], []>} : vector<4x64xbf16>, vector<64x16xbf16>, vector<4x16xf32> -> vector<4x16xf32>
    %114 = vector.broadcast %1 : vector<1x16xf32> to vector<4x16xf32>
    %115 = arith.addf %113, %114 : vector<4x16xf32>
    %cst_79 = arith.constant 0.000000e+00 : f32
    %116 = vector.broadcast %cst_79 : f32 to vector<4x16xf32>
    %117 = arith.maximumf %115, %116 : vector<4x16xf32>
    %118 = arith.truncf %117 : vector<4x16xf32> to vector<4x16xbf16>
    %c9_80 = arith.constant 9 : index
    %c0_81 = arith.constant 0 : index
    %c0_82 = arith.constant 0 : index
    %119 = vector.load %arg4[%c9_80, %c0_81, %c0_82] : memref<16x16x32xbf16, #tpu.memory_space<vmem>>, vector<1x16x32xbf16>
    %120 = vector.shape_cast %119 : vector<1x16x32xbf16> to vector<16x32xbf16>
    %cst_83 = arith.constant dense<0.000000e+00> : vector<4x32xf32>
    %121 = tpu.matmul %118, %120, %cst_83 {dimension_numbers = #tpu.dot_dimension_numbers<[1], [0], [0], [1], [0, 0, 1, 1], [], []>} : vector<4x16xbf16>, vector<16x32xbf16>, vector<4x32xf32> -> vector<4x32xf32>
    %122 = arith.addf %110, %121 : vector<4x32xf32>
    %c0_84 = arith.constant 0 : index
    %c10 = arith.constant 10 : index
    %c0_85 = arith.constant 0 : index
    %123 = vector.load %arg1[%c0_84, %c10, %c0_85] : memref<4x16x64xbf16, #tpu.memory_space<vmem>>, vector<4x1x64xbf16>
    %124 = vector.shape_cast %123 : vector<4x1x64xbf16> to vector<4x64xbf16>
    %cst_86 = arith.constant dense<0.000000e+00> : vector<4x16xf32>
    %125 = tpu.matmul %124, %0, %cst_86 {dimension_numbers = #tpu.dot_dimension_numbers<[1], [0], [0], [1], [0, 0, 1, 1], [], []>} : vector<4x64xbf16>, vector<64x16xbf16>, vector<4x16xf32> -> vector<4x16xf32>
    %126 = vector.broadcast %1 : vector<1x16xf32> to vector<4x16xf32>
    %127 = arith.addf %125, %126 : vector<4x16xf32>
    %cst_87 = arith.constant 0.000000e+00 : f32
    %128 = vector.broadcast %cst_87 : f32 to vector<4x16xf32>
    %129 = arith.maximumf %127, %128 : vector<4x16xf32>
    %130 = arith.truncf %129 : vector<4x16xf32> to vector<4x16xbf16>
    %c10_88 = arith.constant 10 : index
    %c0_89 = arith.constant 0 : index
    %c0_90 = arith.constant 0 : index
    %131 = vector.load %arg4[%c10_88, %c0_89, %c0_90] : memref<16x16x32xbf16, #tpu.memory_space<vmem>>, vector<1x16x32xbf16>
    %132 = vector.shape_cast %131 : vector<1x16x32xbf16> to vector<16x32xbf16>
    %cst_91 = arith.constant dense<0.000000e+00> : vector<4x32xf32>
    %133 = tpu.matmul %130, %132, %cst_91 {dimension_numbers = #tpu.dot_dimension_numbers<[1], [0], [0], [1], [0, 0, 1, 1], [], []>} : vector<4x16xbf16>, vector<16x32xbf16>, vector<4x32xf32> -> vector<4x32xf32>
    %134 = arith.addf %122, %133 : vector<4x32xf32>
    %c0_92 = arith.constant 0 : index
    %c11 = arith.constant 11 : index
    %c0_93 = arith.constant 0 : index
    %135 = vector.load %arg1[%c0_92, %c11, %c0_93] : memref<4x16x64xbf16, #tpu.memory_space<vmem>>, vector<4x1x64xbf16>
    %136 = vector.shape_cast %135 : vector<4x1x64xbf16> to vector<4x64xbf16>
    %cst_94 = arith.constant dense<0.000000e+00> : vector<4x16xf32>
    %137 = tpu.matmul %136, %0, %cst_94 {dimension_numbers = #tpu.dot_dimension_numbers<[1], [0], [0], [1], [0, 0, 1, 1], [], []>} : vector<4x64xbf16>, vector<64x16xbf16>, vector<4x16xf32> -> vector<4x16xf32>
    %138 = vector.broadcast %1 : vector<1x16xf32> to vector<4x16xf32>
    %139 = arith.addf %137, %138 : vector<4x16xf32>
    %cst_95 = arith.constant 0.000000e+00 : f32
    %140 = vector.broadcast %cst_95 : f32 to vector<4x16xf32>
    %141 = arith.maximumf %139, %140 : vector<4x16xf32>
    %142 = arith.truncf %141 : vector<4x16xf32> to vector<4x16xbf16>
    %c11_96 = arith.constant 11 : index
    %c0_97 = arith.constant 0 : index
    %c0_98 = arith.constant 0 : index
    %143 = vector.load %arg4[%c11_96, %c0_97, %c0_98] : memref<16x16x32xbf16, #tpu.memory_space<vmem>>, vector<1x16x32xbf16>
    %144 = vector.shape_cast %143 : vector<1x16x32xbf16> to vector<16x32xbf16>
    %cst_99 = arith.constant dense<0.000000e+00> : vector<4x32xf32>
    %145 = tpu.matmul %142, %144, %cst_99 {dimension_numbers = #tpu.dot_dimension_numbers<[1], [0], [0], [1], [0, 0, 1, 1], [], []>} : vector<4x16xbf16>, vector<16x32xbf16>, vector<4x32xf32> -> vector<4x32xf32>
    %146 = arith.addf %134, %145 : vector<4x32xf32>
    %c0_100 = arith.constant 0 : index
    %c12 = arith.constant 12 : index
    %c0_101 = arith.constant 0 : index
    %147 = vector.load %arg1[%c0_100, %c12, %c0_101] : memref<4x16x64xbf16, #tpu.memory_space<vmem>>, vector<4x1x64xbf16>
    %148 = vector.shape_cast %147 : vector<4x1x64xbf16> to vector<4x64xbf16>
    %cst_102 = arith.constant dense<0.000000e+00> : vector<4x16xf32>
    %149 = tpu.matmul %148, %0, %cst_102 {dimension_numbers = #tpu.dot_dimension_numbers<[1], [0], [0], [1], [0, 0, 1, 1], [], []>} : vector<4x64xbf16>, vector<64x16xbf16>, vector<4x16xf32> -> vector<4x16xf32>
    %150 = vector.broadcast %1 : vector<1x16xf32> to vector<4x16xf32>
    %151 = arith.addf %149, %150 : vector<4x16xf32>
    %cst_103 = arith.constant 0.000000e+00 : f32
    %152 = vector.broadcast %cst_103 : f32 to vector<4x16xf32>
    %153 = arith.maximumf %151, %152 : vector<4x16xf32>
    %154 = arith.truncf %153 : vector<4x16xf32> to vector<4x16xbf16>
    %c12_104 = arith.constant 12 : index
    %c0_105 = arith.constant 0 : index
    %c0_106 = arith.constant 0 : index
    %155 = vector.load %arg4[%c12_104, %c0_105, %c0_106] : memref<16x16x32xbf16, #tpu.memory_space<vmem>>, vector<1x16x32xbf16>
    %156 = vector.shape_cast %155 : vector<1x16x32xbf16> to vector<16x32xbf16>
    %cst_107 = arith.constant dense<0.000000e+00> : vector<4x32xf32>
    %157 = tpu.matmul %154, %156, %cst_107 {dimension_numbers = #tpu.dot_dimension_numbers<[1], [0], [0], [1], [0, 0, 1, 1], [], []>} : vector<4x16xbf16>, vector<16x32xbf16>, vector<4x32xf32> -> vector<4x32xf32>
    %158 = arith.addf %146, %157 : vector<4x32xf32>
    %c0_108 = arith.constant 0 : index
    %c13 = arith.constant 13 : index
    %c0_109 = arith.constant 0 : index
    %159 = vector.load %arg1[%c0_108, %c13, %c0_109] : memref<4x16x64xbf16, #tpu.memory_space<vmem>>, vector<4x1x64xbf16>
    %160 = vector.shape_cast %159 : vector<4x1x64xbf16> to vector<4x64xbf16>
    %cst_110 = arith.constant dense<0.000000e+00> : vector<4x16xf32>
    %161 = tpu.matmul %160, %0, %cst_110 {dimension_numbers = #tpu.dot_dimension_numbers<[1], [0], [0], [1], [0, 0, 1, 1], [], []>} : vector<4x64xbf16>, vector<64x16xbf16>, vector<4x16xf32> -> vector<4x16xf32>
    %162 = vector.broadcast %1 : vector<1x16xf32> to vector<4x16xf32>
    %163 = arith.addf %161, %162 : vector<4x16xf32>
    %cst_111 = arith.constant 0.000000e+00 : f32
    %164 = vector.broadcast %cst_111 : f32 to vector<4x16xf32>
    %165 = arith.maximumf %163, %164 : vector<4x16xf32>
    %166 = arith.truncf %165 : vector<4x16xf32> to vector<4x16xbf16>
    %c13_112 = arith.constant 13 : index
    %c0_113 = arith.constant 0 : index
    %c0_114 = arith.constant 0 : index
    %167 = vector.load %arg4[%c13_112, %c0_113, %c0_114] : memref<16x16x32xbf16, #tpu.memory_space<vmem>>, vector<1x16x32xbf16>
    %168 = vector.shape_cast %167 : vector<1x16x32xbf16> to vector<16x32xbf16>
    %cst_115 = arith.constant dense<0.000000e+00> : vector<4x32xf32>
    %169 = tpu.matmul %166, %168, %cst_115 {dimension_numbers = #tpu.dot_dimension_numbers<[1], [0], [0], [1], [0, 0, 1, 1], [], []>} : vector<4x16xbf16>, vector<16x32xbf16>, vector<4x32xf32> -> vector<4x32xf32>
    %170 = arith.addf %158, %169 : vector<4x32xf32>
    %c0_116 = arith.constant 0 : index
    %c14 = arith.constant 14 : index
    %c0_117 = arith.constant 0 : index
    %171 = vector.load %arg1[%c0_116, %c14, %c0_117] : memref<4x16x64xbf16, #tpu.memory_space<vmem>>, vector<4x1x64xbf16>
    %172 = vector.shape_cast %171 : vector<4x1x64xbf16> to vector<4x64xbf16>
    %cst_118 = arith.constant dense<0.000000e+00> : vector<4x16xf32>
    %173 = tpu.matmul %172, %0, %cst_118 {dimension_numbers = #tpu.dot_dimension_numbers<[1], [0], [0], [1], [0, 0, 1, 1], [], []>} : vector<4x64xbf16>, vector<64x16xbf16>, vector<4x16xf32> -> vector<4x16xf32>
    %174 = vector.broadcast %1 : vector<1x16xf32> to vector<4x16xf32>
    %175 = arith.addf %173, %174 : vector<4x16xf32>
    %cst_119 = arith.constant 0.000000e+00 : f32
    %176 = vector.broadcast %cst_119 : f32 to vector<4x16xf32>
    %177 = arith.maximumf %175, %176 : vector<4x16xf32>
    %178 = arith.truncf %177 : vector<4x16xf32> to vector<4x16xbf16>
    %c14_120 = arith.constant 14 : index
    %c0_121 = arith.constant 0 : index
    %c0_122 = arith.constant 0 : index
    %179 = vector.load %arg4[%c14_120, %c0_121, %c0_122] : memref<16x16x32xbf16, #tpu.memory_space<vmem>>, vector<1x16x32xbf16>
    %180 = vector.shape_cast %179 : vector<1x16x32xbf16> to vector<16x32xbf16>
    %cst_123 = arith.constant dense<0.000000e+00> : vector<4x32xf32>
    %181 = tpu.matmul %178, %180, %cst_123 {dimension_numbers = #tpu.dot_dimension_numbers<[1], [0], [0], [1], [0, 0, 1, 1], [], []>} : vector<4x16xbf16>, vector<16x32xbf16>, vector<4x32xf32> -> vector<4x32xf32>
    %182 = arith.addf %170, %181 : vector<4x32xf32>
    %c0_124 = arith.constant 0 : index
    %c15 = arith.constant 15 : index
    %c0_125 = arith.constant 0 : index
    %183 = vector.load %arg1[%c0_124, %c15, %c0_125] : memref<4x16x64xbf16, #tpu.memory_space<vmem>>, vector<4x1x64xbf16>
    %184 = vector.shape_cast %183 : vector<4x1x64xbf16> to vector<4x64xbf16>
    %cst_126 = arith.constant dense<0.000000e+00> : vector<4x16xf32>
    %185 = tpu.matmul %184, %0, %cst_126 {dimension_numbers = #tpu.dot_dimension_numbers<[1], [0], [0], [1], [0, 0, 1, 1], [], []>} : vector<4x64xbf16>, vector<64x16xbf16>, vector<4x16xf32> -> vector<4x16xf32>
    %186 = vector.broadcast %1 : vector<1x16xf32> to vector<4x16xf32>
    %187 = arith.addf %185, %186 : vector<4x16xf32>
    %cst_127 = arith.constant 0.000000e+00 : f32
    %188 = vector.broadcast %cst_127 : f32 to vector<4x16xf32>
    %189 = arith.maximumf %187, %188 : vector<4x16xf32>
    %190 = arith.truncf %189 : vector<4x16xf32> to vector<4x16xbf16>
    %c15_128 = arith.constant 15 : index
    %c0_129 = arith.constant 0 : index
    %c0_130 = arith.constant 0 : index
    %191 = vector.load %arg4[%c15_128, %c0_129, %c0_130] : memref<16x16x32xbf16, #tpu.memory_space<vmem>>, vector<1x16x32xbf16>
    %192 = vector.shape_cast %191 : vector<1x16x32xbf16> to vector<16x32xbf16>
    %cst_131 = arith.constant dense<0.000000e+00> : vector<4x32xf32>
    %193 = tpu.matmul %190, %192, %cst_131 {dimension_numbers = #tpu.dot_dimension_numbers<[1], [0], [0], [1], [0, 0, 1, 1], [], []>} : vector<4x16xbf16>, vector<16x32xbf16>, vector<4x32xf32> -> vector<4x32xf32>
    %194 = arith.addf %182, %193 : vector<4x32xf32>
    %c0_132 = arith.constant 0 : index
    %c0_133 = arith.constant 0 : index
    %195 = vector.load %arg5[%c0_132, %c0_133] : memref<1x32xf32, #tpu.memory_space<vmem>>, vector<1x32xf32>
    %196 = vector.broadcast %195 : vector<1x32xf32> to vector<4x32xf32>
    %197 = arith.addf %194, %196 : vector<4x32xf32>
    %c0_134 = arith.constant 0 : index
    %c0_135 = arith.constant 0 : index
    %c0_136 = arith.constant 0 : index
    %198 = vector.load %arg6[%c0_134, %c0_135, %c0_136] : memref<4x1x32xf32, #tpu.memory_space<vmem>>, vector<4x1x32xf32>
    %199 = vector.shape_cast %198 : vector<4x1x32xf32> to vector<4x32xf32>
    %200 = vector.shape_cast %197 : vector<4x32xf32> to vector<4x1x32xf32>
    tpu.vector_store %arg6[%c0_134, %c0_135, %c0_136], %200 {strides = array<i32>} : memref<4x1x32xf32, #tpu.memory_space<vmem>>, vector<4x1x32xf32>,
    return
  }
  func.func @transform_0(%arg0: i32) -> (i32, i32, i32) {
    %c0_i32 = arith.constant 0 : i32
    %c0_i32_0 = arith.constant 0 : i32
    %c0_i32_1 = arith.constant 0 : i32
    return %arg0, %c0_i32, %c0_i32_0 : i32, i32, i32
  }
  func.func @transform_1(%arg0: i32) -> (i32, i32) {
    %c0_i32 = arith.constant 0 : i32
    %c0_i32_0 = arith.constant 0 : i32
    %c0_i32_1 = arith.constant 0 : i32
    return %c0_i32, %c0_i32_0 : i32, i32
  }
  func.func @transform_2(%arg0: i32) -> (i32, i32) {
    %c0_i32 = arith.constant 0 : i32
    %c0_i32_0 = arith.constant 0 : i32
    %c0_i32_1 = arith.constant 0 : i32
    return %c0_i32, %c0_i32_0 : i32, i32
  }
  func.func @transform_3(%arg0: i32) -> (i32, i32, i32) {
    %c0_i32 = arith.constant 0 : i32
    %c0_i32_0 = arith.constant 0 : i32
    %c0_i32_1 = arith.constant 0 : i32
    %c0_i32_2 = arith.constant 0 : i32
    return %c0_i32, %c0_i32_0, %c0_i32_1 : i32, i32, i32
  }
  func.func @transform_4(%arg0: i32) -> (i32, i32) {
    %c0_i32 = arith.constant 0 : i32
    %c0_i32_0 = arith.constant 0 : i32
    %c0_i32_1 = arith.constant 0 : i32
    return %c0_i32, %c0_i32_0 : i32, i32
  }
  func.func @transform_5(%arg0: i32) -> (i32, i32, i32) {
    %c0_i32 = arith.constant 0 : i32
    %c0_i32_0 = arith.constant 0 : i32
    %c0_i32_1 = arith.constant 0 : i32
    return %arg0, %c0_i32, %c0_i32_0 : i32, i32, i32
  }
}

</mosaic_0001>

<bundles_post_ra>
// kernel: embedding_bn_relu44_forward.1
= control target key start
LH: loop header
LB: loop body
LE: loop exit
PB: predicated region body
PF: predicated region fallthrough
CT: control target
= control target key end

     0   :  { %10 = vsyncpa [#allocation3], 0  ;;  %s2064_s0 = inlined_call_operand.vmem [shape: bf16[8,16,64], index: 0, kind: input, shape index: {}]   ;;  %s2065_s1 = inlined_call_operand.vmem [shape: bf16[64,16], index: 1, kind: input, shape index: {}]   ;;  %s2066_s2 = inlined_call_operand.vmem [shape: f32[1,16], index: 2, kind: input, shape index: {}]   ;;  %s2067_s3 = inlined_call_operand.vmem [shape: bf16[16,16,32], index: 3, kind: input, shape index: {}]   ;;  %s2068_s4 = inlined_call_operand.vmem [shape: f32[1,32], index: 4, kind: input, shape index: {}]   ;;  %s2069_s5 = inlined_call_operand.hbm [shape: f32[8,1,32], index: 5, kind: output, shape index: {}]  }
   0x1   :  { %12 = vsyncpa [#allocation3 + $0x1], 0  ;;  %s1692_s18 = smov 0   ;;  %s1694_s19 = smov 0  }
   0x2   :  { %s1696_s20 = smov 0   ;;  %s1698_s21 = smov 0  }
   0x3 LB: > { %s1345_s22 = sadd.s32 4294967295, %s1658_s21   ;;  %s1346_s23 = sadd.s32 4294967294, %s1658_s21   ;;  %s1658_s21 = sphi %s1698_s21, %s2075_s21   ;;  %s1654_s20 = sphi %s1696_s20, %s2074_s20   ;;  %s1650_s19 = sphi %s1694_s19, %s2073_s19   ;;  %s1646_s18 = sphi %s1692_s18, %s2072_s18  }
   0x4   : > { %s1715_s24 = sadd.s32 1, %s1658_s21   ;;  %s135_s25 = sadd.s32 1, %s1654_s20 }
   0x5   : > { %s132_s26 = ssub.s32 %s1658_s21, %s1715_s24  ;;  %p145_p0 = scmp.ne.s32.totalorder %s1654_s20, %s1650_s19 }
   0x6   : > { %p133_p1 = scmp.eq.s32.totalorder %s132_s26, 0  ;;  %p146_p2 = scmp.eq.s32.totalorder %s1345_s22, 1 }
   0x7   : > { %p151_p3 = scmp.ne.s32.totalorder %s1650_s19, %s1646_s18  ;;  %p152_p4 = scmp.eq.s32.totalorder %s1346_s23, 1 }
   0x8   : > { %s1725_s27 = scalar_select %p133_p1, %s1654_s20, %s135_s25  }
   0x9   : > { %p1727_p5 = por %p146_p2, %p145_p0  ;;  %p1731_p6 = por %p152_p4, %p151_p3 }
   0xa   : > { %p1349_p7 = scmp.ge.s32.totalorder %s1658_s21, 1  ;;  %p192_p8 = scmp.lt.s32.totalorder %s1658_s21, 3 }
   0xc   : > { %p193_p9 = pnand %p1349_p7, %p192_p8 }
   0xd   : > { %s1742_s7 = sshll.u32 (!%p193_p9), %s1345_s22, 2  ;;  %s218_s26 = sand.u32 (!%p193_p9), 1, %s1650_s19  }
   0xe   : > { %196 = sbr.rel (%p193_p9) target bundleno = 563 (0x233), region = 40  ;;  %p222_p10 = scmp.lt.s32.totalorder (!%p193_p9), %s1742_s7, 7 }
   0xf   : > { %s1350_s30 = sshll.u32 (!%p193_p9), %s218_s26, 2  ;;  %s1616_s23 = scalar_lea.hbm (!%p193_p9), %s2069_s5, 8 }
  0x10   : > { %s220_s12 = scalar_lea.vmem (!%p193_p9), [#allocation2], %s1350_s30 }
  0x11   : > { %s1281_s13 = sshll.u32 (!%p193_p9), %s220_s12, 4  ;;  %s1282_s13 = int_to_ptr.vmem [resolvable:$true] %s1281_s13 }
  0x13   : > { %v1740_v0 = vld [vmem:[%s2065_s1 + $0x18] sm:$0xff]  ;;  %v1750_v1 = vld [vmem:[%s2065_s1 + $0x10] sm:$0xff]  ;;  %s223_s10 = scalar_select %p222_p10, %s1742_s7, 7  ;;  %v1758_v2 = vld [vmem:[%s2065_s1 + $0x8] sm:$0xff]  ;;  %vm263_vm0 = vcmask 1041409   ;;  %vm266_vm1 = vcmask 1042434  }
  0x14   : > { %304 = vmatpush.bf16.msra.mxu0 %v1740_v0  ;;  %331 = vmatpush.bf16.msra.mxu1 %v1740_v0  ;;  %v1774_v11 = vld [vmem:[%s2065_s1] sm:$0xff]  ;;  %vm269_vm2 = vcmask 1043459   ;;  %vm296_vm3 = vcmask 523264   ;;  %v1538_v30 = vld [vmem:[%s2067_s3 + $0x8] sm:$0xff]  ;;  %vm351_vm4 = vcmask 130048   ;;  %vm1264_vm5 = vcmask 253952  }
  0x15   : > { %s1532_s11 = sshll.u32 %s223_s10, 3  ;;  %v1537_v31 = vld [vmem:[%s2067_s3] sm:$0xff]  ;;  %362 = vmatpush.bf16.msra.mxu2 %v1538_v30 }
  0x16   : > { %s1763_s16 = scalar_lea.vmem %s2064_s0, %s1532_s11  ;;  %384 = vmatpush.bf16.msra.mxu3 %v1537_v31  ;;  %v1814_v51 = vld [vmem:[%s2066_s2] ss:$0 sm:$0xff]  ;;  %s1280_s11 = scalar_lea.hbm %s2069_s5, %s1742_s7 }
  0x17   : > { %v239_v3 = vld [vmem:[%s1763_s16] sm:$0x1]  ;;  %v240_v4 = vld [vmem:[%s1763_s16 + $0x8] sm:$0x1]  ;;  %v241_v5 = vld [vmem:[%s1763_s16 + $0x10] sm:$0x1] }
  0x18   : > { %305 = vmatpush.bf16.msra.mxu0 %v1750_v1  ;;  %332 = vmatpush.bf16.msra.mxu1 %v1750_v1  ;;  %v242_v6 = vld [vmem:[%s1763_s16 + $0x18] sm:$0x1]  ;;  %v250_v7 = vunpack.c.l.b16 %v239_v3  ;;  %v251_v8 = vunpack.c.l.b16 %v240_v4  ;;  %v252_v9 = vunpack.c.l.b16 %v241_v5  ;;  %v390_v32 = vld [vmem:[%s1763_s16] sm:$0x2]  ;;  %v391_v33 = vld [vmem:[%s1763_s16 + $0x8] sm:$0x2] }
  0x19   : > { %v253_v10 = vunpack.c.l.b16 %v242_v6  ;;  %424 = vmatpush.bf16.msrb.mxu2 %v1740_v0  ;;  %v392_v34 = vld [vmem:[%s1763_s16 + $0x10] sm:$0x2]  ;;  %v398_v35 = vunpack.c.l.b16 %v390_v32  ;;  %v399_v36 = vunpack.c.l.b16 %v391_v33  ;;  %v393_v37 = vld [vmem:[%s1763_s16 + $0x18] sm:$0x2]  ;;  %v512_v52 = vld [vmem:[%s1763_s16] sm:$0x4] }
  0x1a   : > { %v1354_v12 = vunpack.i.l.s16 %v250_v7  ;;  %v1355_v13 = vunpack.i.l.s16 %v251_v8  ;;  %v1356_v14 = vunpack.i.l.s16 %v252_v9  ;;  %v400_v38 = vunpack.c.l.b16 %v392_v34  ;;  %v513_v53 = vld [vmem:[%s1763_s16 + $0x8] sm:$0x4]  ;;  %v514_v54 = vld [vmem:[%s1763_s16 + $0x10] sm:$0x4]  ;;  %v515_v55 = vld [vmem:[%s1763_s16 + $0x18] sm:$0x4] }
  0x1b   : > { %v1357_v15 = vunpack.i.l.s16 %v253_v10  ;;  %v401_v39 = vunpack.c.l.b16 %v393_v37  ;;  %v1388_v40 = vunpack.i.l.s16 %v398_v35  ;;  %v1389_v41 = vunpack.i.l.s16 %v399_v36  ;;  %v639_v30 = vld [vmem:[%s1763_s16 + $0x18] sm:$0x8]  ;;  %s2034_s14 = sshll.u32 %s1280_s11, 4  ;;  %s1270_s7 = scalar_lea.sflag [#allocation3], %s218_s26  ;;  %s1284_s14 = int_to_ptr.hbm [resolvable:$true] %s2034_s14 }
  0x1c   : > { %306 = vmatpush.bf16.msra.mxu0 %v1758_v2  ;;  %333 = vmatpush.bf16.msra.mxu1 %v1758_v2  ;;  %v262_v16 = vrot.slane %v1355_v13, 7  ;;  %v265_v17 = vrot.slane %v1356_v14, 6  ;;  %v317_v18 = vrot.slane %v1354_v12, 1  ;;  %v319_v19 = vrot.slane %v1356_v14, 7  ;;  %s1610_s15 = sshra.s32 %s1284_s14, 4  ;;  %s1611_s15 = int_to_ptr.hbm [resolvable:$true] %s1610_s15 }
  0x1d   : > { %v268_v20 = vrot.slane %v1357_v15, 5  ;;  %v321_v21 = vrot.slane %v1357_v15, 6  ;;  %425 = vmatpush.bf16.msrb.mxu2 %v1750_v1  ;;  %v1390_v42 = vunpack.i.l.s16 %v400_v38  ;;  %v461_v43 = vrot.slane %v1388_v40, 3  ;;  %p1617_p0 = scmp.lt.s32.totalorder %s1611_s15, %s2069_s5 }
  0x1e   : > { %v264_v22 = vsel %vm263_vm0, %v262_v16, %v1354_v12  ;;  %v318_v23 = vsel %vm263_vm0, %v1355_v13, %v317_v18  ;;  %v462_v44 = vrot.slane %v1389_v41, 2  ;;  %v1391_v46 = vunpack.i.l.s16 %v401_v39 }
  0x1f   : > { %v267_v24 = vsel %vm266_vm1, %v265_v17, %v264_v22  ;;  %v320_v25 = vsel %vm266_vm1, %v319_v19, %v318_v23  ;;  %v464_v45 = vrot.slane %v1390_v42, 1  ;;  %v520_v58 = vunpack.c.l.b16 %v512_v52 }
  0x20   : > { %307 = vmatpush.bf16.msra.mxu0 %v1774_v11  ;;  %334 = vmatpush.bf16.msra.mxu1 %v1774_v11  ;;  %v270_v26 = vsel %vm269_vm2, %v268_v20, %v267_v24  ;;  %v322_v27 = vsel %vm269_vm2, %v321_v21, %v320_v25  ;;  %v463_v47 = vsel %vm263_vm0, %v462_v44, %v461_v43  ;;  %v521_v59 = vunpack.c.l.b16 %v513_v53 }
  0x21   : > { %v271_v28 = vpack.c.b16 %v270_v26, %v270_v26  ;;  %v323_v29 = vpack.c.b16 %v322_v27, %v322_v27  ;;  %426 = vmatpush.bf16.msrb.mxu2 %v1758_v2  ;;  %v465_v48 = vsel %vm266_vm1, %v464_v45, %v463_v47  ;;  %v522_v62 = vunpack.c.l.b16 %v514_v54  ;;  %v636_v27 = vld [vmem:[%s1763_s16] sm:$0x8] }
  0x22   : > { %v466_v49 = vsel %vm269_vm2, %v1391_v46, %v465_v48  ;;  %v523_v63 = vunpack.c.l.b16 %v515_v55  ;;  %v1408_v5 = vunpack.i.l.s16 %v520_v58  ;;  %v1409_v6 = vunpack.i.l.s16 %v521_v59  ;;  %v763_v58 = vld [vmem:[%s1763_s16 + $0x1c] sm:$0x1]  ;;  %v761_v59 = vld [vmem:[%s1763_s16 + $0xc] sm:$0x1] }
  0x23   : > { %1374 = vmatmul.msk.bf16.vlgmr.msra.gmra.mxu0 %vm296_vm3, %v271_v28  ;;  %1375 = vmatmul.msk.bf16.vlgmr.msra.gmra.mxu1 %vm296_vm3, %v323_v29  ;;  %v467_v50 = vpack.c.b16 %v466_v49, %v466_v49  ;;  %v1410_v9 = vunpack.i.l.s16 %v522_v62  ;;  %v410_v12 = vrot.slane %v1388_v40, 2  ;;  %v411_v13 = vrot.slane %v1389_v41, 1  ;;  %v637_v28 = vld [vmem:[%s1763_s16 + $0x8] sm:$0x8]  ;;  %v638_v29 = vld [vmem:[%s1763_s16 + $0x10] sm:$0x8] }
  0x24   : > { %475 = vmatpush.bf16.msrb.mxu0 %v1740_v0  ;;  %v1825_v10 = vunpack.i.l.s16 %v523_v63  ;;  %v584_v14 = vrot.slane %v1408_v5, 5  ;;  %v585_v15 = vrot.slane %v1409_v6, 4  ;;  %v414_v25 = vrot.slane %v1391_v46, 7 }
  0x25   : > { %427 = vmatpush.bf16.msrb.mxu2 %v1774_v11  ;;  %v587_v16 = vrot.slane %v1410_v9, 3  ;;  %v412_v22 = vsel %vm263_vm0, %v411_v13, %v410_v12  ;;  %v644_v32 = vunpack.c.l.b16 %v636_v27  ;;  %v645_v33 = vunpack.c.l.b16 %v637_v28 }
  0x26   : > { %v589_v17 = vrot.slane %v1825_v10, 2  ;;  %v586_v19 = vsel %vm263_vm0, %v585_v15, %v584_v14  ;;  %v413_v26 = vsel %vm266_vm1, %v1390_v42, %v412_v22  ;;  %v646_v34 = vunpack.c.l.b16 %v638_v29  ;;  %v885_v29 = vld [vmem:[%s1763_s16 + $0x1c] sm:$0x2] }
  0x27   : > { %v588_v21 = vsel %vm266_vm1, %v587_v16, %v586_v19  ;;  %v415_v31 = vsel %vm269_vm2, %v414_v25, %v413_v26  ;;  %v647_v35 = vunpack.c.l.b16 %v639_v30  ;;  %v1428_v37 = vunpack.i.l.s16 %v644_v32  ;;  %v884_v25 = vld [vmem:[%s1763_s16 + $0x14] sm:$0x2] }
  0x28   : > { %476 = vmatpush.bf16.msrb.mxu0 %v1750_v1  ;;  %v590_v23 = vsel %vm269_vm2, %v589_v17, %v588_v21  ;;  %v416_v36 = vpack.c.b16 %v415_v31, %v415_v31  ;;  %v1429_v38 = vunpack.i.l.s16 %v645_v33  ;;  %v1430_v39 = vunpack.i.l.s16 %v646_v34 }
  0x29   : > { %v591_v24 = vpack.c.b16 %v590_v23, %v590_v23  ;;  %v1849_v40 = vunpack.i.l.s16 %v647_v35  ;;  %v532_v41 = vrot.slane %v1408_v5, 4  ;;  %v533_v42 = vrot.slane %v1409_v6, 3  ;;  %v882_v23 = vld [vmem:[%s1763_s16 + $0x4] sm:$0x2] }
  0x2a   : > { %v708_v43 = vrot.slane %v1428_v37, 7  ;;  %v709_v44 = vrot.slane %v1429_v38, 6  ;;  %v711_v45 = vrot.slane %v1430_v39, 5  ;;  %v535_v48 = vrot.slane %v1410_v9, 2 }
  0x2b   : > { %v713_v46 = vrot.slane %v1849_v40, 4  ;;  %v537_v54 = vrot.slane %v1825_v10, 1  ;;  %v771_v63 = vunpack.c.l.b16 %v763_v58  ;;  %v657_v9 = vrot.slane %v1429_v38, 5 }
  0x2c   : > { %477 = vmatpush.bf16.msrb.mxu0 %v1758_v2  ;;  %v710_v47 = vsel %vm263_vm0, %v709_v44, %v708_v43  ;;  %v659_v16 = vrot.slane %v1430_v39, 4  ;;  %v661_v21 = vrot.slane %v1849_v40, 3  ;;  %v890_v27 = vunpack.c.l.b16 %v882_v23 }
  0x2d   : > { %v712_v49 = vsel %vm266_vm1, %v711_v45, %v710_v47  ;;  %v892_v30 = vunpack.c.l.b16 %v884_v25  ;;  %v893_v32 = vunpack.c.l.b16 %v885_v29 }
  0x2e   : > { %v714_v52 = vsel %vm269_vm2, %v713_v46, %v712_v49  ;;  %v1468_v33 = vunpack.i.l.s16 %v890_v27  ;;  %v1004_v49 = vld [vmem:[%s1763_s16 + $0x4] sm:$0x4] }
  0x2f   : > { %v715_v53 = vpack.c.b16 %v714_v52, %v714_v52  ;;  %v1470_v35 = vunpack.i.l.s16 %v892_v30  ;;  %v1471_v40 = vunpack.i.l.s16 %v893_v32  ;;  %v1006_v52 = vld [vmem:[%s1763_s16 + $0x14] sm:$0x4] }
  0x30   : > { %478 = vmatpush.bf16.msrb.mxu0 %v1774_v11 }
  0x31   : > { %v956_v39 = vrot.slane %v1470_v35, 1 }
  0x33   : > { %1400 = vmatmul.msk.bf16.vlgmr.msrb.gmra.mxu0 %vm296_vm3, %v467_v50  ;;  %v534_v50 = vsel %vm263_vm0, %v533_v42, %v532_v41 }
  0x34   : > { %599 = vmatpush.bf16.msra.mxu0 %v1740_v0  ;;  %v536_v55 = vsel %vm266_vm1, %v535_v48, %v534_v50  ;;  %v1005_v50 = vld [vmem:[%s1763_s16 + $0xc] sm:$0x4] }
  0x38   : > { %600 = vmatpush.bf16.msra.mxu0 %v1750_v1 }
  0x3c   : > { %601 = vmatpush.bf16.msra.mxu0 %v1758_v2 }
  0x40   : > { %602 = vmatpush.bf16.msra.mxu0 %v1774_v11 }
  0x43   : > { %1420 = vmatmul.msk.bf16.vlgmr.msra.gmra.mxu0 %vm296_vm3, %v591_v24  ;;  %v883_v24 = vld [vmem:[%s1763_s16 + $0xc] sm:$0x2] }
  0x44   : > { %723 = vmatpush.bf16.msrb.mxu0 %v1740_v0  ;;  %v891_v28 = vunpack.c.l.b16 %v883_v24 }
  0x46   : > { %v1469_v34 = vunpack.i.l.s16 %v891_v28 }
  0x48   : > { %724 = vmatpush.bf16.msrb.mxu0 %v1750_v1  ;;  %v954_v38 = vrot.slane %v1469_v34, 2 }
  0x4c   : > { %725 = vmatpush.bf16.msrb.mxu0 %v1758_v2 }
  0x50   : > { %726 = vmatpush.bf16.msrb.mxu0 %v1774_v11 }
  0x53   : > { %1440 = vmatmul.msk.bf16.vlgmr.msrb.gmra.mxu0 %vm296_vm3, %v715_v53  ;;  %v1007_v53 = vld [vmem:[%s1763_s16 + $0x1c] sm:$0x4] }
  0x54   : > { %845 = vmatpush.bf16.msra.mxu0 %v1740_v0  ;;  %v1015_v58 = vunpack.c.l.b16 %v1007_v53 }
  0x58   : > { %846 = vmatpush.bf16.msra.mxu0 %v1750_v1 }
  0x5c   : > { %847 = vmatpush.bf16.msra.mxu0 %v1758_v2 }
  0x60   : > { %848 = vmatpush.bf16.msra.mxu0 %v1774_v11 }
  0x64   : > { %967 = vmatpush.bf16.msrb.mxu0 %v1740_v0 }
  0x68   : > { %968 = vmatpush.bf16.msrb.mxu0 %v1750_v1 }
  0x6c   : > { %969 = vmatpush.bf16.msrb.mxu0 %v1758_v2 }
  0x70   : > { %970 = vmatpush.bf16.msrb.mxu0 %v1774_v11 }
  0xa0   : > { %v309_v56 = vpop.f32.mrf.mxu0  ;;  %v336_v57 = vpop.f32.mrf.mxu1 }
  0xa1   : > { %v310_v60 = vadd.f32 %v1814_v51, %v309_v56  ;;  %v337_v61 = vadd.f32 %v1814_v51, %v336_v57  ;;  %v760_v56 = vld [vmem:[%s1763_s16 + $0x4] sm:$0x1]  ;;  %v762_v57 = vld [vmem:[%s1763_s16 + $0x14] sm:$0x1] }
  0xa2   : > { %v770_v62 = vunpack.c.l.b16 %v762_v57  ;;  %v1014_v57 = vunpack.c.l.b16 %v1006_v52 }
  0xa3   : > { %v313_v3 = vmax.f32 %v310_v60, 0.0  ;;  %v340_v4 = vmax.f32 %v337_v61, 0.0  ;;  %v538_v60 = vsel %vm269_vm2, %v537_v54, %v536_v55  ;;  %v768_v61 = vunpack.c.l.b16 %v760_v56 }
  0xa4   : > { %v1450_v6 = vunpack.i.l.s16 %v770_v62  ;;  %v1012_v55 = vunpack.c.l.b16 %v1004_v49  ;;  %v1013_v56 = vunpack.c.l.b16 %v1005_v50  ;;  %v1490_v62 = vunpack.i.l.s16 %v1014_v57 }
  0xa5   : > { %v314_v7 = vpack.c.bf16 %v313_v3, %v313_v3  ;;  %v341_v8 = vpack.c.bf16 %v340_v4, %v340_v4  ;;  %v769_v3 = vunpack.c.l.b16 %v761_v59  ;;  %v539_v4 = vpack.c.b16 %v538_v60, %v538_v60 }
  0xa6   : > { %v1448_v5 = vunpack.i.l.s16 %v768_v61  ;;  %v833_v13 = vrot.slane %v1450_v6, 7  ;;  %v782_v42 = vrot.slane %v1450_v6, 6  ;;  %v1488_v60 = vunpack.i.l.s16 %v1012_v55 }
  0xa7   : > { %1382 = vmatmul.msk.bf16.vlgmr.msra.gmra.mxu2 %vm351_vm4, %v341_v8  ;;  %1387 = vmatmul.msk.bf16.vlgmr.msra.gmra.mxu3 %vm351_vm4, %v314_v7  ;;  %v1873_v7 = vunpack.i.l.s16 %v771_v63  ;;  %v656_v8 = vrot.slane %v1428_v37, 6  ;;  %v1449_v10 = vunpack.i.l.s16 %v769_v3  ;;  %v953_v37 = vrot.slane %v1468_v33, 3 }
  0xa8   : > { %v338_v18 = vpop.f32.mrf.mxu1  ;;  %547 = vmatpush.bf16.msra.mxu2 %v1740_v0  ;;  %v311_v20 = vpop.f32.mrf.mxu0  ;;  %v831_v12 = vrot.slane %v1448_v5, 1  ;;  %v1489_v61 = vunpack.i.l.s16 %v1013_v56  ;;  %v1491_v63 = vunpack.i.l.s16 %v1015_v58  ;;  %v902_v3 = vrot.slane %v1468_v33, 2  ;;  %v1541_v58 = vld [vmem:[%s2067_s3 + $0x20] sm:$0xff] }
  0xa9   : > { %v835_v14 = vrot.slane %v1873_v7, 6  ;;  %v658_v18 = vsel %vm263_vm0, %v657_v9, %v656_v8  ;;  %v955_v41 = vsel %vm263_vm0, %v954_v38, %v953_v37  ;;  %v784_v47 = vrot.slane %v1873_v7, 5 }
  0xaa   : > { %v832_v15 = vsel %vm263_vm0, %v1449_v10, %v831_v12  ;;  %v660_v22 = vsel %vm266_vm1, %v659_v16, %v658_v18  ;;  %v957_v43 = vsel %vm266_vm1, %v956_v39, %v955_v41  ;;  %v1077_v6 = vrot.slane %v1489_v61, 4  ;;  %v1129_v18 = vld [vmem:[%s1763_s16 + $0xc] sm:$0x8] }
  0xab   : > { %v834_v17 = vsel %vm266_vm1, %v833_v13, %v832_v15  ;;  %v662_v26 = vsel %vm269_vm2, %v661_v21, %v660_v22  ;;  %v958_v45 = vsel %vm269_vm2, %v1471_v40, %v957_v43  ;;  %v1079_v7 = vrot.slane %v1490_v62, 3 }
  0xac   : > { %548 = vmatpush.bf16.msra.mxu2 %v1750_v1  ;;  %v836_v19 = vsel %vm269_vm2, %v835_v14, %v834_v17  ;;  %v663_v31 = vpack.c.b16 %v662_v26, %v662_v26  ;;  %v959_v46 = vpack.c.b16 %v958_v45, %v958_v45  ;;  %v1081_v8 = vrot.slane %v1491_v63, 2  ;;  %v1128_v17 = vld [vmem:[%s1763_s16 + $0x4] sm:$0x8] }
  0xad   : > { %v837_v20 = vpack.c.b16 %v836_v19, %v836_v19  ;;  %v906_v15 = vrot.slane %v1471_v40, 7  ;;  %v1130_v19 = vld [vmem:[%s1763_s16 + $0x14] sm:$0x8]  ;;  %v1136_v22 = vunpack.c.l.b16 %v1128_v17  ;;  %v1137_v23 = vunpack.c.l.b16 %v1129_v18 }
  0xae   : > { %v1138_v24 = vunpack.c.l.b16 %v1130_v19  ;;  %v1025_v32 = vrot.slane %v1489_v61, 3  ;;  %v1027_v38 = vrot.slane %v1490_v62, 2  ;;  %v1029_v43 = vrot.slane %v1491_v63, 1  ;;  %v1543_v17 = vld [vmem:[%s2067_s3 + $0x30] sm:$0xff] }
  0xaf   : > { %1460 = vmatmul.msk.bf16.vlgmr.msra.gmra.mxu0 %vm296_vm3, %v837_v20  ;;  %v1131_v20 = vld [vmem:[%s1763_s16 + $0x1c] sm:$0x8]  ;;  %v1508_v27 = vunpack.i.l.s16 %v1136_v22  ;;  %v1509_v28 = vunpack.i.l.s16 %v1137_v23  ;;  %v1546_v22 = vld [vmem:[%s2067_s3 + $0x48] sm:$0xff]  ;;  %s1612_s16 = scalar_lea.hbm %s1611_s15, 4 }
  0xb0   : > { %549 = vmatpush.bf16.msra.mxu2 %v1758_v2  ;;  %1091 = vmatpush.bf16.msra.mxu0 %v1740_v0  ;;  %v1139_v25 = vunpack.c.l.b16 %v1131_v20  ;;  %v1510_v29 = vunpack.i.l.s16 %v1138_v24  ;;  %p1613_p11 = scmp.ne.s32.totalorder %s1611_s15, %s1612_s16  ;;  %p1618_p1 = scmp.lt.s32.totalorder %s1616_s23, %s1612_s16 }
  0xb1   : > { %v1200_v33 = vrot.slane %v1508_v27, 7 }
  0xb2   : > { %v1511_v30 = vunpack.i.l.s16 %v1139_v25  ;;  %p1614_p12 = pnand %p1613_p11, %p1727_p5  ;;  %p1619_p2 = por %p1618_p1, %p1617_p0 }
  0xb4   : > { %550 = vmatpush.bf16.msra.mxu2 %v1774_v11  ;;  %1092 = vmatpush.bf16.msra.mxu0 %v1750_v1  ;;  %v1153_v50 = vrot.slane %v1511_v30, 3  ;;  %p1615_p13 = pneg %p1614_p12 }
  0xb6   : > { %p1620_p3 = pnand %p1619_p2, %p1615_p13 }
  0xb7   : > { %1392 = vmatmul.msk.bf16.vlgmr.msrb.gmra.mxu2 %vm296_vm3, %v416_v36  ;;  %v780_v36 = vrot.slane %v1449_v10, 7 }
  0xb8   : > { %671 = vmatpush.bf16.msrb.mxu2 %v1740_v0  ;;  %1093 = vmatpush.bf16.msra.mxu0 %v1758_v2 }
  0xb9   : > { %v781_v44 = vsel %vm263_vm0, %v780_v36, %v1448_v5  ;;  %v1076_v5 = vrot.slane %v1488_v60, 5  ;;  %v1205_v36 = vrot.slane %v1511_v30, 4 }
  0xba   : > { %v783_v48 = vsel %vm266_vm1, %v782_v42, %v781_v44 }
  0xbb   : > { %v785_v54 = vsel %vm269_vm2, %v784_v47, %v783_v48  ;;  %v1078_v9 = vsel %vm263_vm0, %v1077_v6, %v1076_v5  ;;  %v1149_v47 = vrot.slane %v1509_v28, 5  ;;  %v1151_v48 = vrot.slane %v1510_v29, 4 }
  0xbc   : > { %672 = vmatpush.bf16.msrb.mxu2 %v1750_v1  ;;  %1094 = vmatpush.bf16.msra.mxu0 %v1774_v11  ;;  %v786_v59 = vpack.c.b16 %v785_v54, %v785_v54  ;;  %v1080_v10 = vsel %vm266_vm1, %v1079_v7, %v1078_v9  ;;  %v480_v54 = vpop.f32.mrf.mxu0 }
  0xbd   : > { %v1082_v13 = vsel %vm269_vm2, %v1081_v8, %v1080_v10  ;;  %v481_v55 = vadd.f32 %v1814_v51, %v480_v54  ;;  %v1544_v8 = vld [vmem:[%s2067_s3 + $0x38] sm:$0xff] }
  0xbe   : > { %v1083_v14 = vpack.c.b16 %v1082_v13, %v1082_v13 }
  0xbf   : > { %1480 = vmatmul.msk.bf16.vlgmr.msrb.gmra.mxu0 %vm296_vm3, %v959_v46  ;;  %v1148_v46 = vrot.slane %v1508_v27, 6  ;;  %v484_v56 = vmax.f32 %v481_v55, 0.0  ;;  %v1552_v55 = vld [vmem:[%s2067_s3 + $0x78] sm:$0xff] }
  0xc0   : > { %673 = vmatpush.bf16.msrb.mxu2 %v1758_v2  ;;  %1215 = vmatpush.bf16.msrb.mxu0 %v1740_v0 }
  0xc1   : > { %v1150_v49 = vsel %vm263_vm0, %v1149_v47, %v1148_v46  ;;  %v485_v57 = vpack.c.bf16 %v484_v56, %v484_v56 }
  0xc2   : > { %v1152_v52 = vsel %vm266_vm1, %v1151_v48, %v1150_v49 }
  0xc4   : > { %674 = vmatpush.bf16.msrb.mxu2 %v1774_v11  ;;  %1216 = vmatpush.bf16.msrb.mxu0 %v1750_v1 }
  0xc7   : > { %1412 = vmatmul.msk.bf16.vlgmr.msra.gmra.mxu2 %vm296_vm3, %v539_v4  ;;  %v903_v4 = vrot.slane %v1469_v34, 1  ;;  %v1201_v34 = vrot.slane %v1509_v28, 6 }
  0xc8   : > { %794 = vmatpush.bf16.msra.mxu2 %v1740_v0  ;;  %1217 = vmatpush.bf16.msrb.mxu0 %v1758_v2 }
  0xc9   : > { %v904_v12 = vsel %vm263_vm0, %v903_v4, %v902_v3  ;;  %v1202_v37 = vsel %vm263_vm0, %v1201_v34, %v1200_v33  ;;  %v1548_v34 = vld [vmem:[%s2067_s3 + $0x58] sm:$0xff] }
  0xca   : > { %v905_v16 = vsel %vm266_vm1, %v1470_v35, %v904_v12  ;;  %v1203_v35 = vrot.slane %v1510_v29, 5  ;;  %v1545_v29 = vld [vmem:[%s2067_s3 + $0x40] sm:$0xff] }
  0xcb   : > { %v907_v21 = vsel %vm269_vm2, %v906_v15, %v905_v16 }
  0xcc   : > { %795 = vmatpush.bf16.msra.mxu2 %v1750_v1  ;;  %1218 = vmatpush.bf16.msrb.mxu0 %v1774_v11  ;;  %v908_v26 = vpack.c.b16 %v907_v21, %v907_v21  ;;  %v1204_v39 = vsel %vm266_vm1, %v1203_v35, %v1202_v37 }
  0xcd   : > { %v1206_v41 = vsel %vm269_vm2, %v1205_v36, %v1204_v39 }
  0xce   : > { %v1207_v42 = vpack.c.b16 %v1206_v41, %v1206_v41  ;;  %v1547_v41 = vld [vmem:[%s2067_s3 + $0x50] sm:$0xff] }
  0xcf   : > { %1500 = vmatmul.msk.bf16.vlgmr.msra.gmra.mxu0 %vm296_vm3, %v1083_v14 }
  0xd0   : > { %796 = vmatpush.bf16.msra.mxu2 %v1758_v2 }
  0xd4   : > { %797 = vmatpush.bf16.msra.mxu2 %v1774_v11 }
  0xd7   : > { %1432 = vmatmul.msk.bf16.vlgmr.msrb.gmra.mxu2 %vm296_vm3, %v663_v31  ;;  %v1024_v31 = vrot.slane %v1488_v60, 4  ;;  %v1542_v60 = vld [vmem:[%s2067_s3 + $0x28] sm:$0xff] }
  0xd8   : > { %916 = vmatpush.bf16.msrb.mxu2 %v1740_v0 }
  0xd9   : > { %v1026_v40 = vsel %vm263_vm0, %v1025_v32, %v1024_v31 }
  0xda   : > { %v1028_v44 = vsel %vm266_vm1, %v1027_v38, %v1026_v40 }
  0xdb   : > { %v1030_v45 = vsel %vm269_vm2, %v1029_v43, %v1028_v44 }
  0xdc   : > { %917 = vmatpush.bf16.msrb.mxu2 %v1750_v1 }
  0xdf   : > { %1520 = vmatmul.msk.bf16.vlgmr.msrb.gmra.mxu0 %vm296_vm3, %v1207_v42 }
  0xe0   : > { %918 = vmatpush.bf16.msrb.mxu2 %v1758_v2 }
  0xe4   : > { %919 = vmatpush.bf16.msrb.mxu2 %v1774_v11 }
  0xe7   : > { %1452 = vmatmul.msk.bf16.vlgmr.msra.gmra.mxu2 %vm296_vm3, %v786_v59  ;;  %v482_v59 = vpop.f32.mrf.mxu0 }
  0xe8   : > { %1039 = vmatpush.bf16.msra.mxu2 %v1740_v0 }
  0xec   : > { %1040 = vmatpush.bf16.msra.mxu2 %v1750_v1 }
  0xef   : > { %v604_v3 = vpop.f32.mrf.mxu0 }
  0xf0   : > { %1041 = vmatpush.bf16.msra.mxu2 %v1758_v2  ;;  %v605_v4 = vadd.f32 %v1814_v51, %v604_v3 }
  0xf2   : > { %v608_v5 = vmax.f32 %v605_v4, 0.0 }
  0xf4   : > { %1042 = vmatpush.bf16.msra.mxu2 %v1774_v11  ;;  %v609_v6 = vpack.c.bf16 %v608_v5, %v608_v5 }
  0xf7   : > { %1472 = vmatmul.msk.bf16.vlgmr.msrb.gmra.mxu2 %vm296_vm3, %v908_v26  ;;  %v606_v10 = vpop.f32.mrf.mxu0 }
  0xf8   : > { %1163 = vmatpush.bf16.msrb.mxu2 %v1740_v0  ;;  %v1031_v0 = vpack.c.b16 %v1030_v45, %v1030_v45 }
  0xfc   : > { %1164 = vmatpush.bf16.msrb.mxu2 %v1750_v1  ;;  %v1539_v1 = vld [vmem:[%s2067_s3 + $0x10] sm:$0xff] }
  0xfd   : > { %454 = vmatpush.bf16.msrb.mxu3 %v1539_v1 }
  0xff   : > { %v728_v14 = vpop.f32.mrf.mxu0 }
 0x100   : > { %1165 = vmatpush.bf16.msrb.mxu2 %v1758_v2  ;;  %v1154_v2 = vsel %vm269_vm2, %v1153_v50, %v1152_v52  ;;  %v729_v15 = vadd.f32 %v1814_v51, %v728_v14  ;;  %v1549_v52 = vld [vmem:[%s2067_s3 + $0x60] sm:$0xff] }
 0x101   : > { %v1155_v53 = vpack.c.b16 %v1154_v2, %v1154_v2  ;;  %577 = vmatpush.bf16.msra.mxu3 %v1541_v58 }
 0x102   : > { %v732_v18 = vmax.f32 %v729_v15, 0.0 }
 0x104   : > { %1166 = vmatpush.bf16.msrb.mxu2 %v1774_v11  ;;  %v1540_v11 = vld [vmem:[%s2067_s3 + $0x18] sm:$0xff]  ;;  %v733_v20 = vpack.c.bf16 %v732_v18, %v732_v18 }
 0x105   : > { %505 = vmatpush.bf16.msrb.mxu1 %v1540_v11 }
 0x107   : > { %1492 = vmatmul.msk.bf16.vlgmr.msra.gmra.mxu2 %vm296_vm3, %v1031_v0  ;;  %v730_v23 = vpop.f32.mrf.mxu0  ;;  %v1550_v0 = vld [vmem:[%s2067_s3 + $0x68] sm:$0xff] }
 0x108   : > { %1407 = vmatmul.msk.bf16.vlgmr.msrb.gmra.mxu1 %vm351_vm4, %v485_v57 }
 0x109   : > { %629 = vmatpush.bf16.msra.mxu1 %v1542_v60 }
 0x10d   : > { %753 = vmatpush.bf16.msrb.mxu1 %v1544_v8 }
 0x117   : > { %1512 = vmatmul.msk.bf16.vlgmr.msrb.gmra.mxu2 %vm296_vm3, %v1155_v53 }
 0x118   : > { %1427 = vmatmul.msk.bf16.vlgmr.msra.gmra.mxu1 %vm351_vm4, %v609_v6 }
 0x119   : > { %875 = vmatpush.bf16.msra.mxu1 %v1546_v22 }
 0x128   : > { %1447 = vmatmul.msk.bf16.vlgmr.msrb.gmra.mxu1 %vm351_vm4, %v733_v20 }
 0x129   : > { %997 = vmatpush.bf16.msrb.mxu1 %v1548_v34 }
 0x12a   : > { %v364_v61 = vpop.f32.mrf.mxu2  ;;  %v386_v62 = vpop.f32.mrf.mxu3 }
 0x12b   : > { %v1967_v63 = vadd.f32 %v386_v62, %v364_v61  ;;  %v1551_v62 = vld [vmem:[%s2067_s3 + $0x70] sm:$0xff] }
 0x12c   : > { %v850_v26 = vpop.f32.mrf.mxu0 }
 0x12d   : > { %v851_v27 = vadd.f32 %v1814_v51, %v850_v26 }
 0x12f   : > { %v854_v30 = vmax.f32 %v851_v27, 0.0 }
 0x131   : > { %v855_v32 = vpack.c.bf16 %v854_v30, %v854_v30 }
 0x132   : > { %v366_v7 = vpop.f32.mrf.mxu2  ;;  %v388_v9 = vpop.f32.mrf.mxu3 }
 0x134   : > { %v852_v35 = vpop.f32.mrf.mxu0 }
 0x138   : > { %1467 = vmatmul.msk.bf16.vlgmr.msra.gmra.mxu1 %vm351_vm4, %v855_v32 }
 0x139   : > { %1121 = vmatpush.bf16.msra.mxu1 %v1550_v0 }
 0x13a   : > { %v429_v12 = vpop.f32.mrf.mxu2 }
 0x13b   : > { %v430_v13 = vadd.f32 %v1814_v51, %v429_v12 }
 0x13c   : > { %v972_v38 = vpop.f32.mrf.mxu0 }
 0x13d   : > { %v433_v16 = vmax.f32 %v430_v13, 0.0  ;;  %v973_v39 = vadd.f32 %v1814_v51, %v972_v38 }
 0x13f   : > { %v434_v19 = vpack.c.bf16 %v433_v16, %v433_v16  ;;  %v976_v42 = vmax.f32 %v973_v39, 0.0 }
 0x141   : > { %1399 = vmatmul.msk.bf16.vlgmr.msrb.gmra.mxu3 %vm351_vm4, %v434_v19  ;;  %v977_v44 = vpack.c.bf16 %v976_v42, %v976_v42 }
 0x142   : > { %v431_v21 = vpop.f32.mrf.mxu2  ;;  %701 = vmatpush.bf16.msrb.mxu3 %v1543_v17 }
 0x144   : > { %v974_v46 = vpop.f32.mrf.mxu0 }
 0x148   : > { %1487 = vmatmul.msk.bf16.vlgmr.msrb.gmra.mxu1 %vm351_vm4, %v977_v44 }
 0x149   : > { %1245 = vmatpush.bf16.msrb.mxu1 %v1552_v55 }
 0x14a   : > { %v552_v24 = vpop.f32.mrf.mxu2 }
 0x14b   : > { %v553_v25 = vadd.f32 %v1814_v51, %v552_v24 }
 0x14c   : > { %v1096_v49 = vpop.f32.mrf.mxu0 }
 0x14d   : > { %v556_v28 = vmax.f32 %v553_v25, 0.0  ;;  %v1097_v1 = vadd.f32 %v1814_v51, %v1096_v49 }
 0x14f   : > { %v557_v31 = vpack.c.bf16 %v556_v28, %v556_v28  ;;  %v1100_v2 = vmax.f32 %v1097_v1, 0.0 }
 0x151   : > { %1419 = vmatmul.msk.bf16.vlgmr.msra.gmra.mxu3 %vm351_vm4, %v557_v31  ;;  %v1101_v53 = vpack.c.bf16 %v1100_v2, %v1100_v2 }
 0x152   : > { %v554_v33 = vpop.f32.mrf.mxu2  ;;  %824 = vmatpush.bf16.msra.mxu3 %v1545_v29 }
 0x154   : > { %v1098_v56 = vpop.f32.mrf.mxu0 }
 0x158   : > { %1507 = vmatmul.msk.bf16.vlgmr.msra.gmra.mxu1 %vm351_vm4, %v1101_v53 }
 0x15a   : > { %v676_v36 = vpop.f32.mrf.mxu2 }
 0x15b   : > { %v677_v37 = vadd.f32 %v1814_v51, %v676_v36 }
 0x15c   : > { %v1220_v59 = vpop.f32.mrf.mxu0 }
 0x15d   : > { %v680_v40 = vmax.f32 %v677_v37, 0.0  ;;  %v1221_v60 = vadd.f32 %v1814_v51, %v1220_v59 }
 0x15f   : > { %v681_v43 = vpack.c.bf16 %v680_v40, %v680_v40  ;;  %v1224_v3 = vmax.f32 %v1221_v60, 0.0 }
 0x161   : > { %1439 = vmatmul.msk.bf16.vlgmr.msrb.gmra.mxu3 %vm351_vm4, %v681_v43  ;;  %v1225_v5 = vpack.c.bf16 %v1224_v3, %v1224_v3 }
 0x162   : > { %v678_v45 = vpop.f32.mrf.mxu2  ;;  %946 = vmatpush.bf16.msrb.mxu3 %v1547_v41 }
 0x164   : > { %v1222_v7 = vpop.f32.mrf.mxu0 }
 0x168   : > { %1527 = vmatmul.msk.bf16.vlgmr.msrb.gmra.mxu1 %vm351_vm4, %v1225_v5 }
 0x16a   : > { %v799_v47 = vpop.f32.mrf.mxu2 }
 0x16b   : > { %v800_v48 = vadd.f32 %v1814_v51, %v799_v47 }
 0x16d   : > { %v803_v50 = vmax.f32 %v800_v48, 0.0 }
 0x16f   : > { %v804_v11 = vpack.c.bf16 %v803_v50, %v803_v50 }
 0x171   : > { %1459 = vmatmul.msk.bf16.vlgmr.msra.gmra.mxu3 %vm351_vm4, %v804_v11 }
 0x172   : > { %v801_v54 = vpop.f32.mrf.mxu2  ;;  %1069 = vmatpush.bf16.msra.mxu3 %v1549_v52 }
 0x173   : > { %v1595_v54 = vld [vmem:[%s2068_s4] ss:$0 sm:$0xff] }
 0x17a   : > { %v921_v57 = vpop.f32.mrf.mxu2 }
 0x17b   : > { %v922_v58 = vadd.f32 %v1814_v51, %v921_v57 }
 0x17d   : > { %v925_v61 = vmax.f32 %v922_v58, 0.0 }
 0x17f   : > { %v926_v4 = vpack.c.bf16 %v925_v61, %v925_v61 }
 0x181   : > { %1479 = vmatmul.msk.bf16.vlgmr.msrb.gmra.mxu3 %vm351_vm4, %v926_v4 }
 0x182   : > { %v923_v6 = vpop.f32.mrf.mxu2  ;;  %1193 = vmatpush.bf16.msrb.mxu3 %v1551_v62 }
 0x185   : > { %v507_v17 = vpop.f32.mrf.mxu1 }
 0x18a   : > { %v1044_v8 = vpop.f32.mrf.mxu2 }
 0x18b   : > { %v1045_v9 = vadd.f32 %v1814_v51, %v1044_v8 }
 0x18d   : > { %v1048_v10 = vmax.f32 %v1045_v9, 0.0  ;;  %v509_v20 = vpop.f32.mrf.mxu1 }
 0x18f   : > { %v1049_v12 = vpack.c.bf16 %v1048_v10, %v1048_v10 }
 0x191   : > { %1499 = vmatmul.msk.bf16.vlgmr.msra.gmra.mxu3 %vm351_vm4, %v1049_v12 }
 0x192   : > { %v1046_v13 = vpop.f32.mrf.mxu2 }
 0x195   : > { %v631_v21 = vpop.f32.mrf.mxu1 }
 0x19a   : > { %v1168_v14 = vpop.f32.mrf.mxu2 }
 0x19b   : > { %v1169_v15 = vadd.f32 %v1814_v51, %v1168_v14 }
 0x19d   : > { %v1172_v16 = vmax.f32 %v1169_v15, 0.0  ;;  %v633_v22 = vpop.f32.mrf.mxu1 }
 0x19f   : > { %v1173_v18 = vpack.c.bf16 %v1172_v16, %v1172_v16 }
 0x1a1   : > { %1519 = vmatmul.msk.bf16.vlgmr.msrb.gmra.mxu3 %vm351_vm4, %v1173_v18 }
 0x1a2   : > { %v1170_v19 = vpop.f32.mrf.mxu2 }
 0x1a5   : > { %v755_v23 = vpop.f32.mrf.mxu1 }
 0x1ad   : > { %v757_v27 = vpop.f32.mrf.mxu1 }
 0x1b5   : > { %v877_v29 = vpop.f32.mrf.mxu1 }
 0x1bd   : > { %v879_v32 = vpop.f32.mrf.mxu1 }
 0x1c4   : > { %v456_v24 = vpop.f32.mrf.mxu3 }
 0x1c5   : > { %v460_v25 = vadd.f32 %v456_v24, %v1967_v63  ;;  %v999_v34 = vpop.f32.mrf.mxu1 }
 0x1c7   : > { %v511_v26 = vadd.f32 %v507_v17, %v460_v25 }
 0x1cc   : > { %v458_v28 = vpop.f32.mrf.mxu3 }
 0x1cd   : > { %v1001_v38 = vpop.f32.mrf.mxu1 }
 0x1d4   : > { %v579_v30 = vpop.f32.mrf.mxu3 }
 0x1d5   : > { %v583_v31 = vadd.f32 %v579_v30, %v511_v26  ;;  %v1123_v40 = vpop.f32.mrf.mxu1 }
 0x1d7   : > { %v635_v51 = vadd.f32 %v631_v21, %v583_v31 }
 0x1dc   : > { %v581_v33 = vpop.f32.mrf.mxu3 }
 0x1dd   : > { %v1125_v43 = vpop.f32.mrf.mxu1 }
 0x1e4   : > { %v703_v35 = vpop.f32.mrf.mxu3 }
 0x1e5   : > { %v707_v36 = vadd.f32 %v703_v35, %v635_v51  ;;  %v1247_v45 = vpop.f32.mrf.mxu1 }
 0x1e7   : > { %v759_v37 = vadd.f32 %v755_v23, %v707_v36 }
 0x1ec   : > { %v705_v39 = vpop.f32.mrf.mxu3 }
 0x1ed   : > { %v1249_v46 = vpop.f32.mrf.mxu1 }
 0x1f4   : > { %v826_v41 = vpop.f32.mrf.mxu3 }
 0x1f5   : > { %v830_v42 = vadd.f32 %v826_v41, %v759_v37 }
 0x1f7   : > { %v881_v63 = vadd.f32 %v877_v29, %v830_v42 }
 0x1fc   : > { %v828_v44 = vpop.f32.mrf.mxu3 }
 0x204   : > { %v948_v0 = vpop.f32.mrf.mxu3 }
 0x205   : > { %v952_v49 = vadd.f32 %v948_v0, %v881_v63 }
 0x207   : > { %v1003_v50 = vadd.f32 %v999_v34, %v952_v49 }
 0x20c   : > { %v950_v47 = vpop.f32.mrf.mxu3 }
 0x214   : > { %v1071_v48 = vpop.f32.mrf.mxu3 }
 0x215   : > { %v1075_v52 = vadd.f32 %v1071_v48, %v1003_v50 }
 0x217   : > { %v1127_v2 = vadd.f32 %v1123_v40, %v1075_v52 }
 0x21c   : > { %v1073_v1 = vpop.f32.mrf.mxu3 }
 0x224   : > { %v1195_v11 = vpop.f32.mrf.mxu3 }
 0x225   : > { %v1199_v53 = vadd.f32 %v1195_v11, %v1127_v2 }
 0x227   : > { %v1251_v55 = vadd.f32 %v1247_v45, %v1199_v53 }
 0x229   : > { %v1256_v56 = vadd.f32 %v1595_v54, %v1251_v55 }
 0x22b   : > { %v1258_v57 = vrot.slane %v1256_v56, 1  ;;  %v1259_v58 = vrot.slane %v1256_v56, 2  ;;  %v1260_v59 = vrot.slane %v1256_v56, 3  ;;  %1265 = vst.msk [vmem:[%s220_s12] sm:$0x1] %vm1264_vm5, %v1256_v56 }
 0x22c   : > { %v1197_v60 = vpop.f32.mrf.mxu3 }
 0x22d   : > { %1266 = vst.msk [vmem:[%s220_s12 + $0x1] sm:$0x1] %vm1264_vm5, %v1258_v57 }
 0x22e   : > { %1267 = vst.msk [vmem:[%s220_s12 + $0x2] sm:$0x1] %vm1264_vm5, %v1259_v58 }
 0x22f   : > { %1268 = vst.msk [vmem:[%s220_s12 + $0x3] sm:$0x1] %vm1264_vm5, %v1260_v59 }
 0x230   : > { %1623 = shalt.err (!%p1620_p3)
}
 0x231   : > { %s1660_s26 = smov 16   ;;  %s1661_s6 = smov 1  }
 0x232   : > { %1553 = dma.vmem_to_hbm [thread:$0]  (%p1727_p5), %s1282_s13, 64, %s1284_s14, %s1270_s7, %s1660_s26, %s1660_s26, %s1661_s6  }
 0x233 PF: > { %p1559_p4 = scmp.ge.s32.totalorder %s1658_s21, 2  ;;  %s1298_s8 = sand.u32 1, %s1646_s18  }
 0x234   : > { %s1299_s9 = scalar_lea.sflag [#allocation3], %s1298_s8 }
 0x235   : > { %p1556_p7 = pnand %p1559_p4, %p1731_p6 }
 0x237   : > { %p1557_p8 = pneg %p1556_p7 }
 0x239   : > { %1641 = dma.done.wait (%p1557_p8), %s1299_s9, 64  }
 0x23a   : > { %1643 = vsyncadd (%p1557_p8), %s1299_s9, 4294967232  ;;  %p15_p9 = scmp.ge.s32.totalorder %s1715_s24, 4   ;;  %s2072_s18 = smov %s1650_s19 }
 0x23b   : > { %s2073_s19 = smov %s1654_s20  ;;  %s2074_s20 = smov %s1725_s27 }
 0x23c   : > { %s2075_s21 = smov %s1715_s24  ;;  %17 = sbr.rel (!%p15_p9) target bundleno = 3 (0x3), region = 90 }
 0x241   :  { %1305 = vsyncpa [#allocation3], 1 }
 0x242   :  { %1307 = vsyncpa [#allocation3 + $0x1], 1 }

</bundles_post_ra>
